<compile_context>
chip_gen: v7x
topology: tpu7x:2x2x1
jax: 0.10.0
libtpu: 0.0.40
codegen_flags: <defaults>
</compile_context>

<pallas_src>
import math
import jax
import jax.numpy as jnp
from jax import lax
from jax.experimental import pallas as pl
from jax.experimental.pallas import tpu as pltpu

EMBEDDING_SIZE = 10


# ----------------------------------------------------------------------------
# Pallas kernel: one (batch-tile, time-tile) grid step of a single-layer
# unidirectional GRU with pack/pad semantics:
#   * t >= tokens_length[b]  ->  output row is zero (pad_packed_sequence)
#   * t >= tokens_length[b]  ->  h does NOT advance (pack_padded_sequence),
#     so hn is the hidden state at the last valid timestep.
# Refs:
#   len_ref : (Bt, 1)       int32  valid length per batch row
#   x_ref   : (Tt, Bt, 3Hp) f32    pre-projected inputs, gates r|z|n lane-aligned
#   w_h_ref : (Hp, 3Hp)     bf16   fused hidden weights
#   b_h_ref : (1, 3Hp)      f32    fused hidden bias
#   out_ref : (Tt, Bt, Hp)  bf16   per-step outputs (zeroed past length)
#   hn_ref  : (Bt, Hp)      f32    final hidden state
#   h_ref   : (Bt, Hp)      f32    VMEM carry across time tiles
# ----------------------------------------------------------------------------
def gru_encoder_kernel(len_ref, x_ref, w_h_ref, b_h_ref, out_ref, hn_ref, h_ref):
    Tt, Bt, H3 = x_ref.shape
    Hp = out_ref.shape[2]
    t_blk = pl.program_id(1)

    # Fresh sequence at the first time tile of every batch tile.
    @pl.when(t_blk == 0)
    def _():
        h_ref[...] = jnp.zeros_like(h_ref)

    w_h = w_h_ref[...]                                   # (Hp, 3Hp) bf16, fused
    b_h = jnp.broadcast_to(b_h_ref[...], (Bt, H3))       # hoisted bias broadcast
    lengths = len_ref[...]                               # (Bt, 1) int32
    t0 = t_blk * Tt

    def step(t, h):
        xi = x_ref[t]                                    # (Bt, 3Hp) f32
        # Single fused h-dependent MXU matmul per step (bf16 in, f32 accumulate).
        # TODO(synk): on v5e/v6e with tiny M, pin w_h in the MXU weight regs via
        # pltpu.matmul_push_rhs / matmul_acc_lhs / matmul_pop and measure.
        hh = jnp.dot(h.astype(w_h.dtype), w_h,
                     preferred_element_type=jnp.float32) + b_h
        # Lane-aligned gate slices (each gate block is a multiple of 128 wide).
        r = jax.nn.sigmoid(xi[:, 0 * Hp:1 * Hp] + hh[:, 0 * Hp:1 * Hp])
        z = jax.nn.sigmoid(xi[:, 1 * Hp:2 * Hp] + hh[:, 1 * Hp:2 * Hp])
        n = jnp.tanh(xi[:, 2 * Hp:3 * Hp] + r * hh[:, 2 * Hp:3 * Hp])
        h_new = (1.0 - z) * n + z * h
        valid = (t0 + t) < lengths                       # (Bt, 1) bool, VPU compare
        out_ref[t] = jnp.where(valid, h_new, 0.0).astype(out_ref.dtype)
        return jnp.where(valid, h_new, h)                # freeze h past length

    # Small unroll keeps LLO scheduler visibility while capping vreg live ranges.
    h = lax.fori_loop(0, Tt, step, h_ref[...], unroll=min(Tt, 8))
    h_ref[...] = h
    hn_ref[...] = h.astype(hn_ref.dtype)


# ----------------------------------------------------------------------------
# Parameters. Raw PyTorch-GRU-shaped weights (rows = [r,z,n]) are kept for the
# reference. The kernel gets:
#   * proj_table : (vocab, 3*Hp) f32  = embedding @ fused-input-weights + b_i
#     (embedding folded into the input projection -> no in-kernel E=10 matmul)
#   * w_h_fused  : (Hp, 3*Hp)   bf16  fused, lane-padded, pre-transposed
#   * b_h_fused  : (1, 3*Hp)    f32
# ----------------------------------------------------------------------------
def init_params(key, vocab_size, hidden_size):
    E, H = EMBEDDING_SIZE, hidden_size
    Hp = ((H + 127) // 128) * 128                    # lane-align each gate block
    kE, k1, k2, k3, k4 = jax.random.split(key, 5)
    bound = 1.0 / math.sqrt(H)
    emb = jax.random.normal(kE, (vocab_size, E), jnp.float32)
    w_ih = jax.random.uniform(k1, (3 * H, E), jnp.float32, -bound, bound)
    w_hh = jax.random.uniform(k2, (3 * H, H), jnp.float32, -bound, bound)
    b_ih = jax.random.uniform(k3, (3 * H,), jnp.float32, -bound, bound)
    b_hh = jax.random.uniform(k4, (3 * H,), jnp.float32, -bound, bound)

    w_i = jnp.zeros((E, 3 * Hp), jnp.float32)
    w_h = jnp.zeros((Hp, 3 * Hp), jnp.float32)
    b_i = jnp.zeros((1, 3 * Hp), jnp.float32)
    b_h = jnp.zeros((1, 3 * Hp), jnp.float32)
    for g in range(3):
        w_i = w_i.at[:, g * Hp:g * Hp + H].set(w_ih[g * H:(g + 1) * H].T)
        w_h = w_h.at[:H, g * Hp:g * Hp + H].set(w_hh[g * H:(g + 1) * H].T)
        b_i = b_i.at[0, g * Hp:g * Hp + H].set(b_ih[g * H:(g + 1) * H])
        b_h = b_h.at[0, g * Hp:g * Hp + H].set(b_hh[g * H:(g + 1) * H])

    # Embedding folded into the input projection (same bf16-matmul / f32-acc
    # precision path the kernel/reference use for x projections).
    proj_table = jnp.dot(emb.astype(jnp.bfloat16), w_i.astype(jnp.bfloat16),
                         preferred_element_type=jnp.float32) + b_i   # (V, 3Hp) f32

    return {
        "embedding": emb,
        "hidden_size": H,
        "w_ih": w_ih, "w_hh": w_hh, "b_ih": b_ih, "b_hh": b_hh,   # reference copies
        "proj_table": proj_table,
        "w_h_fused": w_h.astype(jnp.bfloat16),
        "b_h_fused": b_h,
    }


def _vmem_limit_bytes(Tt, Bt, Hp):
    """Scoped-VMEM budget from actual block sizes (double-buffered) + headroom."""
    h3 = 3 * Hp
    blocks = (Tt * Bt * h3 * 4      # input-projection block (f32)
              + Tt * Bt * Hp * 2    # output block (bf16)
              + Hp * h3 * 2         # fused hidden weights (bf16)
              + h3 * 4              # hidden bias
              + Bt * 4              # lengths
              + Bt * Hp * 4)        # hn block
    need = 2 * blocks + Bt * Hp * 4                      # x2 double buffer + h scratch
    return int(min(max(2 * need, 16 * 2 ** 20), 64 * 2 ** 20))


# ----------------------------------------------------------------------------
# Wrapper == Encoder.forward(input_ids, tokens_length)
#   returns (encode_pad: (B, max_len, H) f32, h_n: (1, B, H) f32)
# Batch is padded to a sublane-aligned tile, time to a multiple of the time
# tile; padded rows get length 0 (masked out) and padded steps are masked.
# ----------------------------------------------------------------------------
def encoder_forward(params, input_ids, tokens_length, *, time_tile=16):
    B, T = input_ids.shape
    H = params["hidden_size"]
    Hp = params["w_h_fused"].shape[0]
    H3 = 3 * Hp

    Bt = min(((B + 7) // 8) * 8, 128)                    # sublane-aligned batch tile
    Bp = ((B + Bt - 1) // Bt) * Bt
    Tt = min(T, time_tile)
    Tp = ((T + Tt - 1) // Tt) * Tt

    # Embedding + input projection = one gather of the pre-folded table (JAX glue).
    x = jnp.take(params["proj_table"], input_ids, axis=0)        # (B, T, 3Hp) f32
    x = jnp.transpose(x, (1, 0, 2))                               # (T, B, 3Hp)
    x = jnp.pad(x, ((0, Tp - T), (0, Bp - B), (0, 0)))

    lengths = jnp.asarray(tokens_length, jnp.int32).reshape(B, 1)
    lengths = jnp.pad(lengths, ((0, Bp - B), (0, 0)))             # padded rows: len 0

    grid = (Bp // Bt, Tp // Tt)
    out_tm, hn = pl.pallas_call(
        gru_encoder_kernel,
        out_shape=(jax.ShapeDtypeStruct((Tp, Bp, Hp), jnp.bfloat16),
                   jax.ShapeDtypeStruct((Bp, Hp), jnp.float32)),
        grid_spec=pltpu.PrefetchScalarGridSpec(
            num_scalar_prefetch=0,
            grid=grid,
            in_specs=[
                pl.BlockSpec((Bt, 1), lambda b, t: (b, 0)),         # lengths
                pl.BlockSpec((Tt, Bt, H3), lambda b, t: (t, b, 0)),  # x projections
                pl.BlockSpec((Hp, H3), lambda b, t: (0, 0)),         # w_h (resident)
                pl.BlockSpec((1, H3), lambda b, t: (0, 0)),          # b_h
            ],
            out_specs=(
                pl.BlockSpec((Tt, Bt, Hp), lambda b, t: (t, b, 0)),  # outputs
                pl.BlockSpec((Bt, Hp), lambda b, t: (b, 0)),         # hn (accumulator)
            ),
            scratch_shapes=[pltpu.VMEM((Bt, Hp), jnp.float32)],      # h carry
        ),
        compiler_params=pltpu.CompilerParams(
            dimension_semantics=("parallel", "arbitrary"),           # batch || , time serial
            vmem_limit_bytes=_vmem_limit_bytes(Tt, Bt, Hp),
        ),
    )(lengths, x, params["w_h_fused"], params["b_h_fused"])

    # pad_packed_sequence pads to the batch max length. PyTorch requires host
    # (CPU) lengths for packing, so host ints here match the original contract.
    t_max = int(max(int(l) for l in tokens_length))
    encode_pad = jnp.transpose(out_tm[:t_max, :B, :H], (1, 0, 2)).astype(jnp.float32)
    h_n = hn[:B, :H][None]                                           # (1, B, H)
    return encode_pad, h_n


# Pure-JAX reference: PyTorch-GRU math (unfused weights, same bf16-matmul /
# f32-accumulate precision choice as the kernel), via lax.scan.
def encoder_reference(params, input_ids, tokens_length):
    emb = jnp.take(params["embedding"], input_ids, axis=0)
    B, T, E = emb.shape
    H = params["hidden_size"]
    bf = jnp.bfloat16
    lengths = jnp.asarray(tokens_length, jnp.int32)
    w_ih, w_hh = params["w_ih"], params["w_hh"]
    b_ih, b_hh = params["b_ih"], params["b_hh"]
    wir, wiz, win = [w_ih[g * H:(g + 1) * H].T.astype(bf) for g in range(3)]
    whr, whz, whn = [w_hh[g * H:(g + 1) * H].T.astype(bf) for g in range(3)]
    bir, biz, bin_ = [b_ih[g * H:(g + 1) * H] for g in range(3)]
    bhr, bhz, bhn = [b_hh[g * H:(g + 1) * H] for g in range(3)]

    xs = jnp.transpose(emb, (1, 0, 2)).astype(bf)                           # (T, B, E)
    ms = (jnp.arange(T)[:, None] < lengths[None, :]).astype(jnp.float32)[:, :, None]

    def dot(a, b):
        return jnp.dot(a, b, preferred_element_type=jnp.float32)

    def step(h, inp):
        x, m = inp
        hb = h.astype(bf)
        r = jax.nn.sigmoid(dot(x, wir) + bir + dot(hb, whr) + bhr)
        z = jax.nn.sigmoid(dot(x, wiz) + biz + dot(hb, whz) + bhz)
        n = jnp.tanh(dot(x, win) + bin_ + r * (dot(hb, whn) + bhn))
        h_new = (1.0 - z) * n + z * h
        return m * h_new + (1.0 - m) * h, m * h_new

    h_last, outs = lax.scan(step, jnp.zeros((B, H), jnp.float32), (xs, ms))
    t_max = int(max(int(l) for l in tokens_length))
    return jnp.transpose(outs[:t_max], (1, 0, 2)), h_last[None]


if __name__ == "__main__":
    key = jax.random.PRNGKey(0)
    kp, ki = jax.random.split(key)

    VOCAB, HIDDEN = 20, 32
    B, T = 4, 8
    params = init_params(kp, VOCAB, HIDDEN)

    input_ids = jax.random.randint(ki, (B, T), 0, VOCAB, dtype=jnp.int32)
    tokens_length = [8, 6, 5, 3]   # descending, as pack_padded_sequence requires

    encode_pad, h_n = encoder_forward(params, input_ids, tokens_length)
    encode_pad = jax.block_until_ready(encode_pad)
    h_n = jax.block_until_ready(h_n)

    ref_pad, ref_hn = encoder_reference(params, input_ids, tokens_length)
    assert encode_pad.shape == (B, max(tokens_length), HIDDEN)
    assert h_n.shape == (1, B, HIDDEN)
    # encode_pad goes through one bf16 store -> slightly wider tolerance; h_n is
    # carried in f32 end-to-end and must match tightly.
    assert float(jnp.max(jnp.abs(encode_pad - ref_pad))) < 8e-3
    assert float(jnp.max(jnp.abs(h_n - ref_hn))) < 2e-3
    print("KERNEL_OK")
</pallas_src>

<mosaic_0001>
module attributes {stable_mosaic.version = 11 : i64} {
  func.func @gru_encoder_kernel(%arg0: i32, %arg1: i32, %arg2: memref<8x1xi32, #tpu.memory_space<vmem>>, %arg3: memref<8x8x384xf32, #tpu.memory_space<vmem>>, %arg4: memref<128x384xbf16, #tpu.memory_space<vmem>>, %arg5: memref<1x384xf32, #tpu.memory_space<vmem>>, %arg6: memref<8x8x128xbf16, #tpu.memory_space<vmem>>, %arg7: memref<8x128xf32, #tpu.memory_space<vmem>>, %arg8: memref<8x128xf32, #tpu.memory_space<vmem>>) attributes {dimension_semantics = [#tpu.dimension_semantics<parallel>, #tpu.dimension_semantics<arbitrary>], iteration_bounds = array<i64: 1, 1>, scalar_prefetch = 0 : i64, scratch_operands = 1 : i64, tpu.core_type = #tpu.core_type<tc>, window_params = [{transform_indices = @transform_0, window_bounds = array<i64: 8, 1>}, {transform_indices = @transform_1, window_bounds = array<i64: 8, 8, 384>}, {pipeline_mode = #tpu.pipeline_mode<synchronous>, transform_indices = @transform_2, window_bounds = array<i64: 128, 384>}, {pipeline_mode = #tpu.pipeline_mode<synchronous>, transform_indices = @transform_3, window_bounds = array<i64: 1, 384>}, {transform_indices = @transform_4, window_bounds = array<i64: 8, 8, 128>}, {transform_indices = @transform_5, window_bounds = array<i64: 8, 128>}]} {
    %c0_i32 = arith.constant 0 : i32
    %0 = arith.cmpi eq, %arg1, %c0_i32 : i32
    %1 = arith.extui %0 : i1 to i32
    %c0_i32_0 = arith.constant 0 : i32
    %2 = arith.cmpi ne, %1, %c0_i32_0 : i32
    scf.if %2 {
      %cst_85 = arith.constant 0.000000e+00 : f32
      %388 = vector.broadcast %cst_85 : f32 to vector<8x128xf32>
      %c0_86 = arith.constant 0 : index
      %c0_87 = arith.constant 0 : index
      %389 = vector.load %arg8[%c0_86, %c0_87] : memref<8x128xf32, #tpu.memory_space<vmem>>, vector<8x128xf32>
      tpu.vector_store %arg8[%c0_86, %c0_87], %388 {strides = array<i32>} : memref<8x128xf32, #tpu.memory_space<vmem>>, vector<8x128xf32>,
    } else {
    }
    %c0 = arith.constant 0 : index
    %c0_1 = arith.constant 0 : index
    %3 = vector.load %arg4[%c0, %c0_1] : memref<128x384xbf16, #tpu.memory_space<vmem>>, vector<128x384xbf16>
    %c0_2 = arith.constant 0 : index
    %c0_3 = arith.constant 0 : index
    %4 = vector.load %arg5[%c0_2, %c0_3] : memref<1x384xf32, #tpu.memory_space<vmem>>, vector<1x384xf32>
    %5 = vector.shape_cast %4 : vector<1x384xf32> to vector<1x384xf32>
    %6 = vector.broadcast %5 : vector<1x384xf32> to vector<8x384xf32>
    %c0_4 = arith.constant 0 : index
    %c0_5 = arith.constant 0 : index
    %7 = vector.load %arg2[%c0_4, %c0_5] : memref<8x1xi32, #tpu.memory_space<vmem>>, vector<8x1xi32>
    %c8_i32 = arith.constant 8 : i32
    %8 = arith.muli %arg1, %c8_i32 : i32
    %c0_6 = arith.constant 0 : index
    %c0_7 = arith.constant 0 : index
    %9 = vector.load %arg8[%c0_6, %c0_7] : memref<8x128xf32, #tpu.memory_space<vmem>>, vector<8x128xf32>
    %c0_i32_8 = arith.constant 0 : i32
    %10 = arith.index_cast %c0_i32_8 : i32 to index
    %c0_9 = arith.constant 0 : index
    %c0_10 = arith.constant 0 : index
    %11 = vector.load %arg3[%10, %c0_9, %c0_10] : memref<8x8x384xf32, #tpu.memory_space<vmem>>, vector<1x8x384xf32>
    %12 = vector.shape_cast %11 : vector<1x8x384xf32> to vector<8x384xf32>
    %13 = arith.truncf %9 : vector<8x128xf32> to vector<8x128xbf16>
    %cst = arith.constant dense<0.000000e+00> : vector<8x384xf32>
    %14 = tpu.matmul %13, %3, %cst {dimension_numbers = #tpu.dot_dimension_numbers<[1], [0], [0], [1], [0, 0, 1, 1], [], []>} : vector<8x128xbf16>, vector<128x384xbf16>, vector<8x384xf32> -> vector<8x384xf32>
    %15 = arith.addf %14, %6 : vector<8x384xf32>
    %16 = vector.extract_strided_slice %12 {offsets = [0, 0], sizes = [8, 128], strides = [1, 1]} : vector<8x384xf32> to vector<8x128xf32>
    %17 = vector.extract_strided_slice %15 {offsets = [0, 0], sizes = [8, 128], strides = [1, 1]} : vector<8x384xf32> to vector<8x128xf32>
    %18 = arith.addf %16, %17 : vector<8x128xf32>
    %19 = arith.negf %18 : vector<8x128xf32>
    %20 = math.exp %19 : vector<8x128xf32>
    %cst_11 = arith.constant 1.000000e+00 : f32
    %21 = vector.broadcast %cst_11 : f32 to vector<8x128xf32>
    %22 = arith.addf %21, %20 : vector<8x128xf32>
    %23 = arith.divf %21, %22 : vector<8x128xf32>
    %24 = vector.extract_strided_slice %12 {offsets = [0, 128], sizes = [8, 128], strides = [1, 1]} : vector<8x384xf32> to vector<8x128xf32>
    %25 = vector.extract_strided_slice %15 {offsets = [0, 128], sizes = [8, 128], strides = [1, 1]} : vector<8x384xf32> to vector<8x128xf32>
    %26 = arith.addf %24, %25 : vector<8x128xf32>
    %27 = arith.negf %26 : vector<8x128xf32>
    %28 = math.exp %27 : vector<8x128xf32>
    %cst_12 = arith.constant 1.000000e+00 : f32
    %29 = vector.broadcast %cst_12 : f32 to vector<8x128xf32>
    %30 = arith.addf %29, %28 : vector<8x128xf32>
    %31 = arith.divf %29, %30 : vector<8x128xf32>
    %32 = vector.extract_strided_slice %12 {offsets = [0, 256], sizes = [8, 128], strides = [1, 1]} : vector<8x384xf32> to vector<8x128xf32>
    %33 = vector.extract_strided_slice %15 {offsets = [0, 256], sizes = [8, 128], strides = [1, 1]} : vector<8x384xf32> to vector<8x128xf32>
    %34 = arith.mulf %23, %33 : vector<8x128xf32>
    %35 = arith.addf %32, %34 : vector<8x128xf32>
    %36 = math.tanh %35 : vector<8x128xf32>
    %cst_13 = arith.constant 1.000000e+00 : f32
    %37 = vector.broadcast %cst_13 : f32 to vector<8x128xf32>
    %38 = arith.subf %37, %31 : vector<8x128xf32>
    %39 = arith.mulf %38, %36 : vector<8x128xf32>
    %40 = arith.mulf %31, %9 : vector<8x128xf32>
    %41 = arith.addf %39, %40 : vector<8x128xf32>
    %42 = arith.addi %8, %c0_i32_8 : i32
    %43 = vector.broadcast %42 : i32 to vector<8x1xi32>
    %44 = arith.cmpi slt, %43, %7 : vector<8x1xi32>
    %cst_14 = arith.constant 0.000000e+00 : f32
    %45 = vector.shape_cast %44 : vector<8x1xi1> to vector<8x1xi1>
    %46 = vector.broadcast %45 : vector<8x1xi1> to vector<8x128xi1>
    %47 = vector.broadcast %cst_14 : f32 to vector<8x128xf32>
    %48 = arith.select %46, %41, %47 : vector<8x128xi1>, vector<8x128xf32>
    %49 = arith.truncf %48 : vector<8x128xf32> to vector<8x128xbf16>
    %50 = arith.index_cast %c0_i32_8 : i32 to index
    %c0_15 = arith.constant 0 : index
    %c0_16 = arith.constant 0 : index
    %51 = vector.load %arg6[%50, %c0_15, %c0_16] : memref<8x8x128xbf16, #tpu.memory_space<vmem>>, vector<1x8x128xbf16>
    %52 = vector.shape_cast %51 : vector<1x8x128xbf16> to vector<8x128xbf16>
    %53 = vector.shape_cast %49 : vector<8x128xbf16> to vector<1x8x128xbf16>
    tpu.vector_store %arg6[%50, %c0_15, %c0_16], %53 {strides = array<i32>} : memref<8x8x128xbf16, #tpu.memory_space<vmem>>, vector<1x8x128xbf16>,
    %54 = vector.shape_cast %44 : vector<8x1xi1> to vector<8x1xi1>
    %55 = vector.broadcast %54 : vector<8x1xi1> to vector<8x128xi1>
    %56 = arith.select %55, %41, %9 : vector<8x128xi1>, vector<8x128xf32>
    %c1_i32 = arith.constant 1 : i32
    %57 = arith.index_cast %c1_i32 : i32 to index
    %c0_17 = arith.constant 0 : index
    %c0_18 = arith.constant 0 : index
    %58 = vector.load %arg3[%57, %c0_17, %c0_18] : memref<8x8x384xf32, #tpu.memory_space<vmem>>, vector<1x8x384xf32>
    %59 = vector.shape_cast %58 : vector<1x8x384xf32> to vector<8x384xf32>
    %60 = arith.truncf %56 : vector<8x128xf32> to vector<8x128xbf16>
    %cst_19 = arith.constant dense<0.000000e+00> : vector<8x384xf32>
    %61 = tpu.matmul %60, %3, %cst_19 {dimension_numbers = #tpu.dot_dimension_numbers<[1], [0], [0], [1], [0, 0, 1, 1], [], []>} : vector<8x128xbf16>, vector<128x384xbf16>, vector<8x384xf32> -> vector<8x384xf32>
    %62 = arith.addf %61, %6 : vector<8x384xf32>
    %63 = vector.extract_strided_slice %59 {offsets = [0, 0], sizes = [8, 128], strides = [1, 1]} : vector<8x384xf32> to vector<8x128xf32>
    %64 = vector.extract_strided_slice %62 {offsets = [0, 0], sizes = [8, 128], strides = [1, 1]} : vector<8x384xf32> to vector<8x128xf32>
    %65 = arith.addf %63, %64 : vector<8x128xf32>
    %66 = arith.negf %65 : vector<8x128xf32>
    %67 = math.exp %66 : vector<8x128xf32>
    %cst_20 = arith.constant 1.000000e+00 : f32
    %68 = vector.broadcast %cst_20 : f32 to vector<8x128xf32>
    %69 = arith.addf %68, %67 : vector<8x128xf32>
    %70 = arith.divf %68, %69 : vector<8x128xf32>
    %71 = vector.extract_strided_slice %59 {offsets = [0, 128], sizes = [8, 128], strides = [1, 1]} : vector<8x384xf32> to vector<8x128xf32>
    %72 = vector.extract_strided_slice %62 {offsets = [0, 128], sizes = [8, 128], strides = [1, 1]} : vector<8x384xf32> to vector<8x128xf32>
    %73 = arith.addf %71, %72 : vector<8x128xf32>
    %74 = arith.negf %73 : vector<8x128xf32>
    %75 = math.exp %74 : vector<8x128xf32>
    %cst_21 = arith.constant 1.000000e+00 : f32
    %76 = vector.broadcast %cst_21 : f32 to vector<8x128xf32>
    %77 = arith.addf %76, %75 : vector<8x128xf32>
    %78 = arith.divf %76, %77 : vector<8x128xf32>
    %79 = vector.extract_strided_slice %59 {offsets = [0, 256], sizes = [8, 128], strides = [1, 1]} : vector<8x384xf32> to vector<8x128xf32>
    %80 = vector.extract_strided_slice %62 {offsets = [0, 256], sizes = [8, 128], strides = [1, 1]} : vector<8x384xf32> to vector<8x128xf32>
    %81 = arith.mulf %70, %80 : vector<8x128xf32>
    %82 = arith.addf %79, %81 : vector<8x128xf32>
    %83 = math.tanh %82 : vector<8x128xf32>
    %cst_22 = arith.constant 1.000000e+00 : f32
    %84 = vector.broadcast %cst_22 : f32 to vector<8x128xf32>
    %85 = arith.subf %84, %78 : vector<8x128xf32>
    %86 = arith.mulf %85, %83 : vector<8x128xf32>
    %87 = arith.mulf %78, %56 : vector<8x128xf32>
    %88 = arith.addf %86, %87 : vector<8x128xf32>
    %89 = arith.addi %8, %c1_i32 : i32
    %90 = vector.broadcast %89 : i32 to vector<8x1xi32>
    %91 = arith.cmpi slt, %90, %7 : vector<8x1xi32>
    %cst_23 = arith.constant 0.000000e+00 : f32
    %92 = vector.shape_cast %91 : vector<8x1xi1> to vector<8x1xi1>
    %93 = vector.broadcast %92 : vector<8x1xi1> to vector<8x128xi1>
    %94 = vector.broadcast %cst_23 : f32 to vector<8x128xf32>
    %95 = arith.select %93, %88, %94 : vector<8x128xi1>, vector<8x128xf32>
    %96 = arith.truncf %95 : vector<8x128xf32> to vector<8x128xbf16>
    %97 = arith.index_cast %c1_i32 : i32 to index
    %c0_24 = arith.constant 0 : index
    %c0_25 = arith.constant 0 : index
    %98 = vector.load %arg6[%97, %c0_24, %c0_25] : memref<8x8x128xbf16, #tpu.memory_space<vmem>>, vector<1x8x128xbf16>
    %99 = vector.shape_cast %98 : vector<1x8x128xbf16> to vector<8x128xbf16>
    %100 = vector.shape_cast %96 : vector<8x128xbf16> to vector<1x8x128xbf16>
    tpu.vector_store %arg6[%97, %c0_24, %c0_25], %100 {strides = array<i32>} : memref<8x8x128xbf16, #tpu.memory_space<vmem>>, vector<1x8x128xbf16>,
    %101 = vector.shape_cast %91 : vector<8x1xi1> to vector<8x1xi1>
    %102 = vector.broadcast %101 : vector<8x1xi1> to vector<8x128xi1>
    %103 = arith.select %102, %88, %56 : vector<8x128xi1>, vector<8x128xf32>
    %c2_i32 = arith.constant 2 : i32
    %104 = arith.index_cast %c2_i32 : i32 to index
    %c0_26 = arith.constant 0 : index
    %c0_27 = arith.constant 0 : index
    %105 = vector.load %arg3[%104, %c0_26, %c0_27] : memref<8x8x384xf32, #tpu.memory_space<vmem>>, vector<1x8x384xf32>
    %106 = vector.shape_cast %105 : vector<1x8x384xf32> to vector<8x384xf32>
    %107 = arith.truncf %103 : vector<8x128xf32> to vector<8x128xbf16>
    %cst_28 = arith.constant dense<0.000000e+00> : vector<8x384xf32>
    %108 = tpu.matmul %107, %3, %cst_28 {dimension_numbers = #tpu.dot_dimension_numbers<[1], [0], [0], [1], [0, 0, 1, 1], [], []>} : vector<8x128xbf16>, vector<128x384xbf16>, vector<8x384xf32> -> vector<8x384xf32>
    %109 = arith.addf %108, %6 : vector<8x384xf32>
    %110 = vector.extract_strided_slice %106 {offsets = [0, 0], sizes = [8, 128], strides = [1, 1]} : vector<8x384xf32> to vector<8x128xf32>
    %111 = vector.extract_strided_slice %109 {offsets = [0, 0], sizes = [8, 128], strides = [1, 1]} : vector<8x384xf32> to vector<8x128xf32>
    %112 = arith.addf %110, %111 : vector<8x128xf32>
    %113 = arith.negf %112 : vector<8x128xf32>
    %114 = math.exp %113 : vector<8x128xf32>
    %cst_29 = arith.constant 1.000000e+00 : f32
    %115 = vector.broadcast %cst_29 : f32 to vector<8x128xf32>
    %116 = arith.addf %115, %114 : vector<8x128xf32>
    %117 = arith.divf %115, %116 : vector<8x128xf32>
    %118 = vector.extract_strided_slice %106 {offsets = [0, 128], sizes = [8, 128], strides = [1, 1]} : vector<8x384xf32> to vector<8x128xf32>
    %119 = vector.extract_strided_slice %109 {offsets = [0, 128], sizes = [8, 128], strides = [1, 1]} : vector<8x384xf32> to vector<8x128xf32>
    %120 = arith.addf %118, %119 : vector<8x128xf32>
    %121 = arith.negf %120 : vector<8x128xf32>
    %122 = math.exp %121 : vector<8x128xf32>
    %cst_30 = arith.constant 1.000000e+00 : f32
    %123 = vector.broadcast %cst_30 : f32 to vector<8x128xf32>
    %124 = arith.addf %123, %122 : vector<8x128xf32>
    %125 = arith.divf %123, %124 : vector<8x128xf32>
    %126 = vector.extract_strided_slice %106 {offsets = [0, 256], sizes = [8, 128], strides = [1, 1]} : vector<8x384xf32> to vector<8x128xf32>
    %127 = vector.extract_strided_slice %109 {offsets = [0, 256], sizes = [8, 128], strides = [1, 1]} : vector<8x384xf32> to vector<8x128xf32>
    %128 = arith.mulf %117, %127 : vector<8x128xf32>
    %129 = arith.addf %126, %128 : vector<8x128xf32>
    %130 = math.tanh %129 : vector<8x128xf32>
    %cst_31 = arith.constant 1.000000e+00 : f32
    %131 = vector.broadcast %cst_31 : f32 to vector<8x128xf32>
    %132 = arith.subf %131, %125 : vector<8x128xf32>
    %133 = arith.mulf %132, %130 : vector<8x128xf32>
    %134 = arith.mulf %125, %103 : vector<8x128xf32>
    %135 = arith.addf %133, %134 : vector<8x128xf32>
    %136 = arith.addi %8, %c2_i32 : i32
    %137 = vector.broadcast %136 : i32 to vector<8x1xi32>
    %138 = arith.cmpi slt, %137, %7 : vector<8x1xi32>
    %cst_32 = arith.constant 0.000000e+00 : f32
    %139 = vector.shape_cast %138 : vector<8x1xi1> to vector<8x1xi1>
    %140 = vector.broadcast %139 : vector<8x1xi1> to vector<8x128xi1>
    %141 = vector.broadcast %cst_32 : f32 to vector<8x128xf32>
    %142 = arith.select %140, %135, %141 : vector<8x128xi1>, vector<8x128xf32>
    %143 = arith.truncf %142 : vector<8x128xf32> to vector<8x128xbf16>
    %144 = arith.index_cast %c2_i32 : i32 to index
    %c0_33 = arith.constant 0 : index
    %c0_34 = arith.constant 0 : index
    %145 = vector.load %arg6[%144, %c0_33, %c0_34] : memref<8x8x128xbf16, #tpu.memory_space<vmem>>, vector<1x8x128xbf16>
    %146 = vector.shape_cast %145 : vector<1x8x128xbf16> to vector<8x128xbf16>
    %147 = vector.shape_cast %143 : vector<8x128xbf16> to vector<1x8x128xbf16>
    tpu.vector_store %arg6[%144, %c0_33, %c0_34], %147 {strides = array<i32>} : memref<8x8x128xbf16, #tpu.memory_space<vmem>>, vector<1x8x128xbf16>,
    %148 = vector.shape_cast %138 : vector<8x1xi1> to vector<8x1xi1>
    %149 = vector.broadcast %148 : vector<8x1xi1> to vector<8x128xi1>
    %150 = arith.select %149, %135, %103 : vector<8x128xi1>, vector<8x128xf32>
    %c3_i32 = arith.constant 3 : i32
    %151 = arith.index_cast %c3_i32 : i32 to index
    %c0_35 = arith.constant 0 : index
    %c0_36 = arith.constant 0 : index
    %152 = vector.load %arg3[%151, %c0_35, %c0_36] : memref<8x8x384xf32, #tpu.memory_space<vmem>>, vector<1x8x384xf32>
    %153 = vector.shape_cast %152 : vector<1x8x384xf32> to vector<8x384xf32>
    %154 = arith.truncf %150 : vector<8x128xf32> to vector<8x128xbf16>
    %cst_37 = arith.constant dense<0.000000e+00> : vector<8x384xf32>
    %155 = tpu.matmul %154, %3, %cst_37 {dimension_numbers = #tpu.dot_dimension_numbers<[1], [0], [0], [1], [0, 0, 1, 1], [], []>} : vector<8x128xbf16>, vector<128x384xbf16>, vector<8x384xf32> -> vector<8x384xf32>
    %156 = arith.addf %155, %6 : vector<8x384xf32>
    %157 = vector.extract_strided_slice %153 {offsets = [0, 0], sizes = [8, 128], strides = [1, 1]} : vector<8x384xf32> to vector<8x128xf32>
    %158 = vector.extract_strided_slice %156 {offsets = [0, 0], sizes = [8, 128], strides = [1, 1]} : vector<8x384xf32> to vector<8x128xf32>
    %159 = arith.addf %157, %158 : vector<8x128xf32>
    %160 = arith.negf %159 : vector<8x128xf32>
    %161 = math.exp %160 : vector<8x128xf32>
    %cst_38 = arith.constant 1.000000e+00 : f32
    %162 = vector.broadcast %cst_38 : f32 to vector<8x128xf32>
    %163 = arith.addf %162, %161 : vector<8x128xf32>
    %164 = arith.divf %162, %163 : vector<8x128xf32>
    %165 = vector.extract_strided_slice %153 {offsets = [0, 128], sizes = [8, 128], strides = [1, 1]} : vector<8x384xf32> to vector<8x128xf32>
    %166 = vector.extract_strided_slice %156 {offsets = [0, 128], sizes = [8, 128], strides = [1, 1]} : vector<8x384xf32> to vector<8x128xf32>
    %167 = arith.addf %165, %166 : vector<8x128xf32>
    %168 = arith.negf %167 : vector<8x128xf32>
    %169 = math.exp %168 : vector<8x128xf32>
    %cst_39 = arith.constant 1.000000e+00 : f32
    %170 = vector.broadcast %cst_39 : f32 to vector<8x128xf32>
    %171 = arith.addf %170, %169 : vector<8x128xf32>
    %172 = arith.divf %170, %171 : vector<8x128xf32>
    %173 = vector.extract_strided_slice %153 {offsets = [0, 256], sizes = [8, 128], strides = [1, 1]} : vector<8x384xf32> to vector<8x128xf32>
    %174 = vector.extract_strided_slice %156 {offsets = [0, 256], sizes = [8, 128], strides = [1, 1]} : vector<8x384xf32> to vector<8x128xf32>
    %175 = arith.mulf %164, %174 : vector<8x128xf32>
    %176 = arith.addf %173, %175 : vector<8x128xf32>
    %177 = math.tanh %176 : vector<8x128xf32>
    %cst_40 = arith.constant 1.000000e+00 : f32
    %178 = vector.broadcast %cst_40 : f32 to vector<8x128xf32>
    %179 = arith.subf %178, %172 : vector<8x128xf32>
    %180 = arith.mulf %179, %177 : vector<8x128xf32>
    %181 = arith.mulf %172, %150 : vector<8x128xf32>
    %182 = arith.addf %180, %181 : vector<8x128xf32>
    %183 = arith.addi %8, %c3_i32 : i32
    %184 = vector.broadcast %183 : i32 to vector<8x1xi32>
    %185 = arith.cmpi slt, %184, %7 : vector<8x1xi32>
    %cst_41 = arith.constant 0.000000e+00 : f32
    %186 = vector.shape_cast %185 : vector<8x1xi1> to vector<8x1xi1>
    %187 = vector.broadcast %186 : vector<8x1xi1> to vector<8x128xi1>
    %188 = vector.broadcast %cst_41 : f32 to vector<8x128xf32>
    %189 = arith.select %187, %182, %188 : vector<8x128xi1>, vector<8x128xf32>
    %190 = arith.truncf %189 : vector<8x128xf32> to vector<8x128xbf16>
    %191 = arith.index_cast %c3_i32 : i32 to index
    %c0_42 = arith.constant 0 : index
    %c0_43 = arith.constant 0 : index
    %192 = vector.load %arg6[%191, %c0_42, %c0_43] : memref<8x8x128xbf16, #tpu.memory_space<vmem>>, vector<1x8x128xbf16>
    %193 = vector.shape_cast %192 : vector<1x8x128xbf16> to vector<8x128xbf16>
    %194 = vector.shape_cast %190 : vector<8x128xbf16> to vector<1x8x128xbf16>
    tpu.vector_store %arg6[%191, %c0_42, %c0_43], %194 {strides = array<i32>} : memref<8x8x128xbf16, #tpu.memory_space<vmem>>, vector<1x8x128xbf16>,
    %195 = vector.shape_cast %185 : vector<8x1xi1> to vector<8x1xi1>
    %196 = vector.broadcast %195 : vector<8x1xi1> to vector<8x128xi1>
    %197 = arith.select %196, %182, %150 : vector<8x128xi1>, vector<8x128xf32>
    %c4_i32 = arith.constant 4 : i32
    %198 = arith.index_cast %c4_i32 : i32 to index
    %c0_44 = arith.constant 0 : index
    %c0_45 = arith.constant 0 : index
    %199 = vector.load %arg3[%198, %c0_44, %c0_45] : memref<8x8x384xf32, #tpu.memory_space<vmem>>, vector<1x8x384xf32>
    %200 = vector.shape_cast %199 : vector<1x8x384xf32> to vector<8x384xf32>
    %201 = arith.truncf %197 : vector<8x128xf32> to vector<8x128xbf16>
    %cst_46 = arith.constant dense<0.000000e+00> : vector<8x384xf32>
    %202 = tpu.matmul %201, %3, %cst_46 {dimension_numbers = #tpu.dot_dimension_numbers<[1], [0], [0], [1], [0, 0, 1, 1], [], []>} : vector<8x128xbf16>, vector<128x384xbf16>, vector<8x384xf32> -> vector<8x384xf32>
    %203 = arith.addf %202, %6 : vector<8x384xf32>
    %204 = vector.extract_strided_slice %200 {offsets = [0, 0], sizes = [8, 128], strides = [1, 1]} : vector<8x384xf32> to vector<8x128xf32>
    %205 = vector.extract_strided_slice %203 {offsets = [0, 0], sizes = [8, 128], strides = [1, 1]} : vector<8x384xf32> to vector<8x128xf32>
    %206 = arith.addf %204, %205 : vector<8x128xf32>
    %207 = arith.negf %206 : vector<8x128xf32>
    %208 = math.exp %207 : vector<8x128xf32>
    %cst_47 = arith.constant 1.000000e+00 : f32
    %209 = vector.broadcast %cst_47 : f32 to vector<8x128xf32>
    %210 = arith.addf %209, %208 : vector<8x128xf32>
    %211 = arith.divf %209, %210 : vector<8x128xf32>
    %212 = vector.extract_strided_slice %200 {offsets = [0, 128], sizes = [8, 128], strides = [1, 1]} : vector<8x384xf32> to vector<8x128xf32>
    %213 = vector.extract_strided_slice %203 {offsets = [0, 128], sizes = [8, 128], strides = [1, 1]} : vector<8x384xf32> to vector<8x128xf32>
    %214 = arith.addf %212, %213 : vector<8x128xf32>
    %215 = arith.negf %214 : vector<8x128xf32>
    %216 = math.exp %215 : vector<8x128xf32>
    %cst_48 = arith.constant 1.000000e+00 : f32
    %217 = vector.broadcast %cst_48 : f32 to vector<8x128xf32>
    %218 = arith.addf %217, %216 : vector<8x128xf32>
    %219 = arith.divf %217, %218 : vector<8x128xf32>
    %220 = vector.extract_strided_slice %200 {offsets = [0, 256], sizes = [8, 128], strides = [1, 1]} : vector<8x384xf32> to vector<8x128xf32>
    %221 = vector.extract_strided_slice %203 {offsets = [0, 256], sizes = [8, 128], strides = [1, 1]} : vector<8x384xf32> to vector<8x128xf32>
    %222 = arith.mulf %211, %221 : vector<8x128xf32>
    %223 = arith.addf %220, %222 : vector<8x128xf32>
    %224 = math.tanh %223 : vector<8x128xf32>
    %cst_49 = arith.constant 1.000000e+00 : f32
    %225 = vector.broadcast %cst_49 : f32 to vector<8x128xf32>
    %226 = arith.subf %225, %219 : vector<8x128xf32>
    %227 = arith.mulf %226, %224 : vector<8x128xf32>
    %228 = arith.mulf %219, %197 : vector<8x128xf32>
    %229 = arith.addf %227, %228 : vector<8x128xf32>
    %230 = arith.addi %8, %c4_i32 : i32
    %231 = vector.broadcast %230 : i32 to vector<8x1xi32>
    %232 = arith.cmpi slt, %231, %7 : vector<8x1xi32>
    %cst_50 = arith.constant 0.000000e+00 : f32
    %233 = vector.shape_cast %232 : vector<8x1xi1> to vector<8x1xi1>
    %234 = vector.broadcast %233 : vector<8x1xi1> to vector<8x128xi1>
    %235 = vector.broadcast %cst_50 : f32 to vector<8x128xf32>
    %236 = arith.select %234, %229, %235 : vector<8x128xi1>, vector<8x128xf32>
    %237 = arith.truncf %236 : vector<8x128xf32> to vector<8x128xbf16>
    %238 = arith.index_cast %c4_i32 : i32 to index
    %c0_51 = arith.constant 0 : index
    %c0_52 = arith.constant 0 : index
    %239 = vector.load %arg6[%238, %c0_51, %c0_52] : memref<8x8x128xbf16, #tpu.memory_space<vmem>>, vector<1x8x128xbf16>
    %240 = vector.shape_cast %239 : vector<1x8x128xbf16> to vector<8x128xbf16>
    %241 = vector.shape_cast %237 : vector<8x128xbf16> to vector<1x8x128xbf16>
    tpu.vector_store %arg6[%238, %c0_51, %c0_52], %241 {strides = array<i32>} : memref<8x8x128xbf16, #tpu.memory_space<vmem>>, vector<1x8x128xbf16>,
    %242 = vector.shape_cast %232 : vector<8x1xi1> to vector<8x1xi1>
    %243 = vector.broadcast %242 : vector<8x1xi1> to vector<8x128xi1>
    %244 = arith.select %243, %229, %197 : vector<8x128xi1>, vector<8x128xf32>
    %c5_i32 = arith.constant 5 : i32
    %245 = arith.index_cast %c5_i32 : i32 to index
    %c0_53 = arith.constant 0 : index
    %c0_54 = arith.constant 0 : index
    %246 = vector.load %arg3[%245, %c0_53, %c0_54] : memref<8x8x384xf32, #tpu.memory_space<vmem>>, vector<1x8x384xf32>
    %247 = vector.shape_cast %246 : vector<1x8x384xf32> to vector<8x384xf32>
    %248 = arith.truncf %244 : vector<8x128xf32> to vector<8x128xbf16>
    %cst_55 = arith.constant dense<0.000000e+00> : vector<8x384xf32>
    %249 = tpu.matmul %248, %3, %cst_55 {dimension_numbers = #tpu.dot_dimension_numbers<[1], [0], [0], [1], [0, 0, 1, 1], [], []>} : vector<8x128xbf16>, vector<128x384xbf16>, vector<8x384xf32> -> vector<8x384xf32>
    %250 = arith.addf %249, %6 : vector<8x384xf32>
    %251 = vector.extract_strided_slice %247 {offsets = [0, 0], sizes = [8, 128], strides = [1, 1]} : vector<8x384xf32> to vector<8x128xf32>
    %252 = vector.extract_strided_slice %250 {offsets = [0, 0], sizes = [8, 128], strides = [1, 1]} : vector<8x384xf32> to vector<8x128xf32>
    %253 = arith.addf %251, %252 : vector<8x128xf32>
    %254 = arith.negf %253 : vector<8x128xf32>
    %255 = math.exp %254 : vector<8x128xf32>
    %cst_56 = arith.constant 1.000000e+00 : f32
    %256 = vector.broadcast %cst_56 : f32 to vector<8x128xf32>
    %257 = arith.addf %256, %255 : vector<8x128xf32>
    %258 = arith.divf %256, %257 : vector<8x128xf32>
    %259 = vector.extract_strided_slice %247 {offsets = [0, 128], sizes = [8, 128], strides = [1, 1]} : vector<8x384xf32> to vector<8x128xf32>
    %260 = vector.extract_strided_slice %250 {offsets = [0, 128], sizes = [8, 128], strides = [1, 1]} : vector<8x384xf32> to vector<8x128xf32>
    %261 = arith.addf %259, %260 : vector<8x128xf32>
    %262 = arith.negf %261 : vector<8x128xf32>
    %263 = math.exp %262 : vector<8x128xf32>
    %cst_57 = arith.constant 1.000000e+00 : f32
    %264 = vector.broadcast %cst_57 : f32 to vector<8x128xf32>
    %265 = arith.addf %264, %263 : vector<8x128xf32>
    %266 = arith.divf %264, %265 : vector<8x128xf32>
    %267 = vector.extract_strided_slice %247 {offsets = [0, 256], sizes = [8, 128], strides = [1, 1]} : vector<8x384xf32> to vector<8x128xf32>
    %268 = vector.extract_strided_slice %250 {offsets = [0, 256], sizes = [8, 128], strides = [1, 1]} : vector<8x384xf32> to vector<8x128xf32>
    %269 = arith.mulf %258, %268 : vector<8x128xf32>
    %270 = arith.addf %267, %269 : vector<8x128xf32>
    %271 = math.tanh %270 : vector<8x128xf32>
    %cst_58 = arith.constant 1.000000e+00 : f32
    %272 = vector.broadcast %cst_58 : f32 to vector<8x128xf32>
    %273 = arith.subf %272, %266 : vector<8x128xf32>
    %274 = arith.mulf %273, %271 : vector<8x128xf32>
    %275 = arith.mulf %266, %244 : vector<8x128xf32>
    %276 = arith.addf %274, %275 : vector<8x128xf32>
    %277 = arith.addi %8, %c5_i32 : i32
    %278 = vector.broadcast %277 : i32 to vector<8x1xi32>
    %279 = arith.cmpi slt, %278, %7 : vector<8x1xi32>
    %cst_59 = arith.constant 0.000000e+00 : f32
    %280 = vector.shape_cast %279 : vector<8x1xi1> to vector<8x1xi1>
    %281 = vector.broadcast %280 : vector<8x1xi1> to vector<8x128xi1>
    %282 = vector.broadcast %cst_59 : f32 to vector<8x128xf32>
    %283 = arith.select %281, %276, %282 : vector<8x128xi1>, vector<8x128xf32>
    %284 = arith.truncf %283 : vector<8x128xf32> to vector<8x128xbf16>
    %285 = arith.index_cast %c5_i32 : i32 to index
    %c0_60 = arith.constant 0 : index
    %c0_61 = arith.constant 0 : index
    %286 = vector.load %arg6[%285, %c0_60, %c0_61] : memref<8x8x128xbf16, #tpu.memory_space<vmem>>, vector<1x8x128xbf16>
    %287 = vector.shape_cast %286 : vector<1x8x128xbf16> to vector<8x128xbf16>
    %288 = vector.shape_cast %284 : vector<8x128xbf16> to vector<1x8x128xbf16>
    tpu.vector_store %arg6[%285, %c0_60, %c0_61], %288 {strides = array<i32>} : memref<8x8x128xbf16, #tpu.memory_space<vmem>>, vector<1x8x128xbf16>,
    %289 = vector.shape_cast %279 : vector<8x1xi1> to vector<8x1xi1>
    %290 = vector.broadcast %289 : vector<8x1xi1> to vector<8x128xi1>
    %291 = arith.select %290, %276, %244 : vector<8x128xi1>, vector<8x128xf32>
    %c6_i32 = arith.constant 6 : i32
    %292 = arith.index_cast %c6_i32 : i32 to index
    %c0_62 = arith.constant 0 : index
    %c0_63 = arith.constant 0 : index
    %293 = vector.load %arg3[%292, %c0_62, %c0_63] : memref<8x8x384xf32, #tpu.memory_space<vmem>>, vector<1x8x384xf32>
    %294 = vector.shape_cast %293 : vector<1x8x384xf32> to vector<8x384xf32>
    %295 = arith.truncf %291 : vector<8x128xf32> to vector<8x128xbf16>
    %cst_64 = arith.constant dense<0.000000e+00> : vector<8x384xf32>
    %296 = tpu.matmul %295, %3, %cst_64 {dimension_numbers = #tpu.dot_dimension_numbers<[1], [0], [0], [1], [0, 0, 1, 1], [], []>} : vector<8x128xbf16>, vector<128x384xbf16>, vector<8x384xf32> -> vector<8x384xf32>
    %297 = arith.addf %296, %6 : vector<8x384xf32>
    %298 = vector.extract_strided_slice %294 {offsets = [0, 0], sizes = [8, 128], strides = [1, 1]} : vector<8x384xf32> to vector<8x128xf32>
    %299 = vector.extract_strided_slice %297 {offsets = [0, 0], sizes = [8, 128], strides = [1, 1]} : vector<8x384xf32> to vector<8x128xf32>
    %300 = arith.addf %298, %299 : vector<8x128xf32>
    %301 = arith.negf %300 : vector<8x128xf32>
    %302 = math.exp %301 : vector<8x128xf32>
    %cst_65 = arith.constant 1.000000e+00 : f32
    %303 = vector.broadcast %cst_65 : f32 to vector<8x128xf32>
    %304 = arith.addf %303, %302 : vector<8x128xf32>
    %305 = arith.divf %303, %304 : vector<8x128xf32>
    %306 = vector.extract_strided_slice %294 {offsets = [0, 128], sizes = [8, 128], strides = [1, 1]} : vector<8x384xf32> to vector<8x128xf32>
    %307 = vector.extract_strided_slice %297 {offsets = [0, 128], sizes = [8, 128], strides = [1, 1]} : vector<8x384xf32> to vector<8x128xf32>
    %308 = arith.addf %306, %307 : vector<8x128xf32>
    %309 = arith.negf %308 : vector<8x128xf32>
    %310 = math.exp %309 : vector<8x128xf32>
    %cst_66 = arith.constant 1.000000e+00 : f32
    %311 = vector.broadcast %cst_66 : f32 to vector<8x128xf32>
    %312 = arith.addf %311, %310 : vector<8x128xf32>
    %313 = arith.divf %311, %312 : vector<8x128xf32>
    %314 = vector.extract_strided_slice %294 {offsets = [0, 256], sizes = [8, 128], strides = [1, 1]} : vector<8x384xf32> to vector<8x128xf32>
    %315 = vector.extract_strided_slice %297 {offsets = [0, 256], sizes = [8, 128], strides = [1, 1]} : vector<8x384xf32> to vector<8x128xf32>
    %316 = arith.mulf %305, %315 : vector<8x128xf32>
    %317 = arith.addf %314, %316 : vector<8x128xf32>
    %318 = math.tanh %317 : vector<8x128xf32>
    %cst_67 = arith.constant 1.000000e+00 : f32
    %319 = vector.broadcast %cst_67 : f32 to vector<8x128xf32>
    %320 = arith.subf %319, %313 : vector<8x128xf32>
    %321 = arith.mulf %320, %318 : vector<8x128xf32>
    %322 = arith.mulf %313, %291 : vector<8x128xf32>
    %323 = arith.addf %321, %322 : vector<8x128xf32>
    %324 = arith.addi %8, %c6_i32 : i32
    %325 = vector.broadcast %324 : i32 to vector<8x1xi32>
    %326 = arith.cmpi slt, %325, %7 : vector<8x1xi32>
    %cst_68 = arith.constant 0.000000e+00 : f32
    %327 = vector.shape_cast %326 : vector<8x1xi1> to vector<8x1xi1>
    %328 = vector.broadcast %327 : vector<8x1xi1> to vector<8x128xi1>
    %329 = vector.broadcast %cst_68 : f32 to vector<8x128xf32>
    %330 = arith.select %328, %323, %329 : vector<8x128xi1>, vector<8x128xf32>
    %331 = arith.truncf %330 : vector<8x128xf32> to vector<8x128xbf16>
    %332 = arith.index_cast %c6_i32 : i32 to index
    %c0_69 = arith.constant 0 : index
    %c0_70 = arith.constant 0 : index
    %333 = vector.load %arg6[%332, %c0_69, %c0_70] : memref<8x8x128xbf16, #tpu.memory_space<vmem>>, vector<1x8x128xbf16>
    %334 = vector.shape_cast %333 : vector<1x8x128xbf16> to vector<8x128xbf16>
    %335 = vector.shape_cast %331 : vector<8x128xbf16> to vector<1x8x128xbf16>
    tpu.vector_store %arg6[%332, %c0_69, %c0_70], %335 {strides = array<i32>} : memref<8x8x128xbf16, #tpu.memory_space<vmem>>, vector<1x8x128xbf16>,
    %336 = vector.shape_cast %326 : vector<8x1xi1> to vector<8x1xi1>
    %337 = vector.broadcast %336 : vector<8x1xi1> to vector<8x128xi1>
    %338 = arith.select %337, %323, %291 : vector<8x128xi1>, vector<8x128xf32>
    %c7_i32 = arith.constant 7 : i32
    %339 = arith.index_cast %c7_i32 : i32 to index
    %c0_71 = arith.constant 0 : index
    %c0_72 = arith.constant 0 : index
    %340 = vector.load %arg3[%339, %c0_71, %c0_72] : memref<8x8x384xf32, #tpu.memory_space<vmem>>, vector<1x8x384xf32>
    %341 = vector.shape_cast %340 : vector<1x8x384xf32> to vector<8x384xf32>
    %342 = arith.truncf %338 : vector<8x128xf32> to vector<8x128xbf16>
    %cst_73 = arith.constant dense<0.000000e+00> : vector<8x384xf32>
    %343 = tpu.matmul %342, %3, %cst_73 {dimension_numbers = #tpu.dot_dimension_numbers<[1], [0], [0], [1], [0, 0, 1, 1], [], []>} : vector<8x128xbf16>, vector<128x384xbf16>, vector<8x384xf32> -> vector<8x384xf32>
    %344 = arith.addf %343, %6 : vector<8x384xf32>
    %345 = vector.extract_strided_slice %341 {offsets = [0, 0], sizes = [8, 128], strides = [1, 1]} : vector<8x384xf32> to vector<8x128xf32>
    %346 = vector.extract_strided_slice %344 {offsets = [0, 0], sizes = [8, 128], strides = [1, 1]} : vector<8x384xf32> to vector<8x128xf32>
    %347 = arith.addf %345, %346 : vector<8x128xf32>
    %348 = arith.negf %347 : vector<8x128xf32>
    %349 = math.exp %348 : vector<8x128xf32>
    %cst_74 = arith.constant 1.000000e+00 : f32
    %350 = vector.broadcast %cst_74 : f32 to vector<8x128xf32>
    %351 = arith.addf %350, %349 : vector<8x128xf32>
    %352 = arith.divf %350, %351 : vector<8x128xf32>
    %353 = vector.extract_strided_slice %341 {offsets = [0, 128], sizes = [8, 128], strides = [1, 1]} : vector<8x384xf32> to vector<8x128xf32>
    %354 = vector.extract_strided_slice %344 {offsets = [0, 128], sizes = [8, 128], strides = [1, 1]} : vector<8x384xf32> to vector<8x128xf32>
    %355 = arith.addf %353, %354 : vector<8x128xf32>
    %356 = arith.negf %355 : vector<8x128xf32>
    %357 = math.exp %356 : vector<8x128xf32>
    %cst_75 = arith.constant 1.000000e+00 : f32
    %358 = vector.broadcast %cst_75 : f32 to vector<8x128xf32>
    %359 = arith.addf %358, %357 : vector<8x128xf32>
    %360 = arith.divf %358, %359 : vector<8x128xf32>
    %361 = vector.extract_strided_slice %341 {offsets = [0, 256], sizes = [8, 128], strides = [1, 1]} : vector<8x384xf32> to vector<8x128xf32>
    %362 = vector.extract_strided_slice %344 {offsets = [0, 256], sizes = [8, 128], strides = [1, 1]} : vector<8x384xf32> to vector<8x128xf32>
    %363 = arith.mulf %352, %362 : vector<8x128xf32>
    %364 = arith.addf %361, %363 : vector<8x128xf32>
    %365 = math.tanh %364 : vector<8x128xf32>
    %cst_76 = arith.constant 1.000000e+00 : f32
    %366 = vector.broadcast %cst_76 : f32 to vector<8x128xf32>
    %367 = arith.subf %366, %360 : vector<8x128xf32>
    %368 = arith.mulf %367, %365 : vector<8x128xf32>
    %369 = arith.mulf %360, %338 : vector<8x128xf32>
    %370 = arith.addf %368, %369 : vector<8x128xf32>
    %371 = arith.addi %8, %c7_i32 : i32
    %372 = vector.broadcast %371 : i32 to vector<8x1xi32>
    %373 = arith.cmpi slt, %372, %7 : vector<8x1xi32>
    %cst_77 = arith.constant 0.000000e+00 : f32
    %374 = vector.shape_cast %373 : vector<8x1xi1> to vector<8x1xi1>
    %375 = vector.broadcast %374 : vector<8x1xi1> to vector<8x128xi1>
    %376 = vector.broadcast %cst_77 : f32 to vector<8x128xf32>
    %377 = arith.select %375, %370, %376 : vector<8x128xi1>, vector<8x128xf32>
    %378 = arith.truncf %377 : vector<8x128xf32> to vector<8x128xbf16>
    %379 = arith.index_cast %c7_i32 : i32 to index
    %c0_78 = arith.constant 0 : index
    %c0_79 = arith.constant 0 : index
    %380 = vector.load %arg6[%379, %c0_78, %c0_79] : memref<8x8x128xbf16, #tpu.memory_space<vmem>>, vector<1x8x128xbf16>
    %381 = vector.shape_cast %380 : vector<1x8x128xbf16> to vector<8x128xbf16>
    %382 = vector.shape_cast %378 : vector<8x128xbf16> to vector<1x8x128xbf16>
    tpu.vector_store %arg6[%379, %c0_78, %c0_79], %382 {strides = array<i32>} : memref<8x8x128xbf16, #tpu.memory_space<vmem>>, vector<1x8x128xbf16>,
    %383 = vector.shape_cast %373 : vector<8x1xi1> to vector<8x1xi1>
    %384 = vector.broadcast %383 : vector<8x1xi1> to vector<8x128xi1>
    %385 = arith.select %384, %370, %338 : vector<8x128xi1>, vector<8x128xf32>
    %c8_i32_80 = arith.constant 8 : i32
    %c0_81 = arith.constant 0 : index
    %c0_82 = arith.constant 0 : index
    %386 = vector.load %arg8[%c0_81, %c0_82] : memref<8x128xf32, #tpu.memory_space<vmem>>, vector<8x128xf32>
    tpu.vector_store %arg8[%c0_81, %c0_82], %385 {strides = array<i32>} : memref<8x128xf32, #tpu.memory_space<vmem>>, vector<8x128xf32>,
    %c0_83 = arith.constant 0 : index
    %c0_84 = arith.constant 0 : index
    %387 = vector.load %arg7[%c0_83, %c0_84] : memref<8x128xf32, #tpu.memory_space<vmem>>, vector<8x128xf32>
    tpu.vector_store %arg7[%c0_83, %c0_84], %385 {strides = array<i32>} : memref<8x128xf32, #tpu.memory_space<vmem>>, vector<8x128xf32>,
    return
  }
  func.func @transform_0(%arg0: i32, %arg1: i32) -> (i32, i32) {
    %c0_i32 = arith.constant 0 : i32
    %c0_i32_0 = arith.constant 0 : i32
    return %arg0, %c0_i32 : i32, i32
  }
  func.func @transform_1(%arg0: i32, %arg1: i32) -> (i32, i32, i32) {
    %c0_i32 = arith.constant 0 : i32
    %c0_i32_0 = arith.constant 0 : i32
    return %arg1, %arg0, %c0_i32 : i32, i32, i32
  }
  func.func @transform_2(%arg0: i32, %arg1: i32) -> (i32, i32) {
    %c0_i32 = arith.constant 0 : i32
    %c0_i32_0 = arith.constant 0 : i32
    %c0_i32_1 = arith.constant 0 : i32
    return %c0_i32, %c0_i32_0 : i32, i32
  }
  func.func @transform_3(%arg0: i32, %arg1: i32) -> (i32, i32) {
    %c0_i32 = arith.constant 0 : i32
    %c0_i32_0 = arith.constant 0 : i32
    %c0_i32_1 = arith.constant 0 : i32
    return %c0_i32, %c0_i32_0 : i32, i32
  }
  func.func @transform_4(%arg0: i32, %arg1: i32) -> (i32, i32, i32) {
    %c0_i32 = arith.constant 0 : i32
    %c0_i32_0 = arith.constant 0 : i32
    return %arg1, %arg0, %c0_i32 : i32, i32, i32
  }
  func.func @transform_5(%arg0: i32, %arg1: i32) -> (i32, i32) {
    %c0_i32 = arith.constant 0 : i32
    %c0_i32_0 = arith.constant 0 : i32
    return %arg0, %c0_i32 : i32, i32
  }
}

</mosaic_0001>

<bundles_post_ra>
// kernel: tpu_custom_call.1
= control target key start
LH: loop header
LB: loop body
LE: loop exit
PB: predicated region body
PF: predicated region fallthrough
CT: control target
= control target key end

     0   :  { %11 = vsyncpa [#allocation4], 0  ;;  %s2267_s0 = inlined_call_operand.vmem [shape: s32[8,1], index: 0, kind: input, shape index: {}]   ;;  %s2268_s1 = inlined_call_operand.hbm [shape: f32[8,8,384], index: 1, kind: input, shape index: {}]   ;;  %s2269_s2 = inlined_call_operand.hbm [shape: bf16[128,384], index: 2, kind: input, shape index: {}]   ;;  %s2270_s3 = inlined_call_operand.vmem [shape: f32[1,384], index: 3, kind: input, shape index: {}]   ;;  %s2271_s4 = inlined_call_operand.hbm [shape: bf16[8,8,128], index: 4, kind: output, shape index: {0}]   ;;  %s2272_s5 = inlined_call_operand.hbm [shape: f32[8,128], index: 5, kind: output, shape index: {1}]  }
   0x1   :  { %12 = vsyncpa [#allocation7], 0 }
   0x2   :  { %13 = vsyncpa [#allocation5], 0 }
   0x3   :  { %14 = vsyncpa [#allocation10], 0  ;;  %s1760_s18 = smov [#allocation3]   ;;  %s1664_s22 = scalar_lea.hbm %s2268_s1, 3072 }
   0x4   :  { %s22_s19 = sshll.u32 %s1760_s18, 4  ;;  %p1665_p0 = scmp.ne.s32.totalorder %s2268_s1, %s1664_s22  ;;  %s23_s19 = int_to_ptr.vmem [resolvable:$true] %s22_s19 }
   0x5   :  { %p1668_p1 = scmp.lt.u32.totalorder %s1664_s22, %s2268_s1 }
   0x7   :  { %p1670_p2 = pnand %p1668_p1, %p1665_p0 }
   0x9   :  { %1673 = shalt.err (!%p1670_p2)
}
   0xa   :  { %s1674_s27 = scalar_lea.vmem %s23_s19, 3072  ;;  %p1679_p4 = scmp.lt.s32.totalorder %s23_s19, %s23_s19 }
   0xb   :  { %p1675_p3 = scmp.ne.s32.totalorder %s23_s19, %s1674_s27  ;;  %p1680_p5 = scmp.lt.s32.totalorder %s1674_s27, %s1674_s27 }
   0xd   :  { %p1681_p6 = por %p1680_p5, %p1679_p4 }
   0xf   :  { %p1682_p7 = pnand %p1681_p6, %p1675_p3 }
  0x11   :  { %1685 = shalt.err (!%p1682_p7)
}
  0x12   :  { %s1761_s28 = smov 384   ;;  %s1762_s29 = smov 24  }
  0x13   :  { %28 = dma.hbm_to_vmem [thread:$0]  %s2268_s1, 3072, %s23_s19, [#allocation4], %s1761_s28, %s1761_s28, %s1762_s29  }
  0x14   :  { %s1763_s7 = smov [#allocation6]   ;;  %s1686_s11 = scalar_lea.hbm %s2269_s2, 3072 }
  0x15   :  { %s34_s8 = sshll.u32 %s1763_s7, 4  ;;  %p1687_p8 = scmp.ne.s32.totalorder %s2269_s2, %s1686_s11  ;;  %s35_s8 = int_to_ptr.vmem [resolvable:$true] %s34_s8 }
  0x16   :  { %p1690_p9 = scmp.lt.u32.totalorder %s1686_s11, %s2269_s2 }
  0x18   :  { %p1692_p10 = pnand %p1690_p9, %p1687_p8 }
  0x1a   :  { %1695 = shalt.err (!%p1692_p10)
}
  0x1b   :  { %s1696_s16 = scalar_lea.vmem %s35_s8, 3072  ;;  %p1701_p12 = scmp.lt.s32.totalorder %s35_s8, %s35_s8 }
  0x1c   :  { %p1697_p11 = scmp.ne.s32.totalorder %s35_s8, %s1696_s16  ;;  %p1702_p13 = scmp.lt.s32.totalorder %s1696_s16, %s1696_s16 }
  0x1e   :  { %p1703_p0 = por %p1702_p13, %p1701_p12 }
  0x20   :  { %p1704_p1 = pnand %p1703_p0, %p1697_p11 }
  0x22   :  { %1707 = shalt.err (!%p1704_p1)
}
  0x23   :  { %s1764_s1 = smov 192   ;;  %s1765_s17 = smov 12  }
  0x24   :  { %40 = dma.hbm_to_vmem [thread:$0]  %s2269_s2, 3072, %s35_s8, [#allocation7], %s1764_s1, %s1764_s1, %s1765_s17  }
  0x25   :  { %1752 = dma.done.wait [#allocation4], 3072  }
  0x26   :  { %1753 = vsyncadd [#allocation4], 4294964224 }
  0x27   :  { %1754 = dma.done.wait [#allocation7], 3072  }
  0x28   :  { %1755 = vsyncadd [#allocation7], 4294964224  ;;  %v1766_v0 = vmov 0.0   ;;  %v1767_v1 = vmov 0   ;;  %vm1768_vm0 = vmmov 0   ;;  %v1878_v16 = vld [vmem:[%s2267_s0] sm:$0xff]  ;;  %v89_v32 = vlaneseq }
  0x29   :  { %1352 = vmatprep.subr.bf16.mxu1 %v1766_v0  ;;  %271 = vmatprep.mubr.bf16.mxu0 %v1767_v1  ;;  %v1834_v2 = vld [vmem:[#allocation6 + $0x4] ss:$12 sps:$4 sm:$0xff]   ;;  %v1836_v3 = vld [vmem:[#allocation6] ss:$12 sps:$4 sm:$0xff]   ;;  %v1839_v4 = vld [vmem:[#allocation6 + $0x1c] ss:$12 sps:$4 sm:$0xff]  }
  0x2a   :  { %1368 = vmatprep.mubr.msk.bf16.mxu1 %vm1768_vm0, %v1766_v0  ;;  %1526 = vset.pattern.permute.xlu0 %v1767_v1  ;;  %v1842_v5 = vld [vmem:[#allocation6 + $0x18] ss:$12 sps:$4 sm:$0xff]   ;;  %v1845_v6 = vld [vmem:[#allocation6 + $0x34] ss:$12 sps:$4 sm:$0xff]   ;;  %v1848_v7 = vld [vmem:[#allocation6 + $0x30] ss:$12 sps:$4 sm:$0xff]  }
  0x2b   :  { %1527 = vset.pattern.permute.xlu1 %v1767_v1  ;;  %239 = vmatprep.subr.bf16.mxu0 %v1834_v2  ;;  %v1851_v8 = vld [vmem:[#allocation6 + $0x4c] ss:$12 sps:$4 sm:$0xff]   ;;  %v1853_v9 = vld [vmem:[#allocation6 + $0x8] ss:$12 sps:$4 sm:$0xff]   ;;  %v1858_v11 = vld [vmem:[#allocation6 + $0x64] ss:$12 sps:$4 sm:$0xff]  }
  0x2c   :  { %240 = vmatpush1.bf16.msra.mxu0 %v1836_v3  ;;  %v1856_v10 = vld [vmem:[#allocation6 + $0x48] ss:$12 sps:$4 sm:$0xff]   ;;  %1353 = vmatpush3.bf16.msra.mxu1 %v1853_v9  ;;  %v1862_v12 = vld [vmem:[#allocation6 + $0x20] ss:$12 sps:$4 sm:$0xff]   ;;  %v1872_v15 = vld [vmem:[#allocation6 + $0x38] ss:$12 sps:$4 sm:$0xff]  }
  0x2d   :  { %241 = vmatprep.subr.bf16.mxu0 %v1839_v4  ;;  %1354 = vmatprep.subr.bf16.mxu1 %v1766_v0  ;;  %v1865_v13 = vld [vmem:[#allocation6 + $0x60] ss:$12 sps:$4 sm:$0xff]   ;;  %v1868_v14 = vld [vmem:[#allocation6 + $0x7c] ss:$12 sps:$4 sm:$0xff]   ;;  %v1881_v17 = vld [vmem:[#allocation6 + $0x78] ss:$12 sps:$4 sm:$0xff]  }
  0x2e   :  { %vm1252_vm1 = vcmp.gt.s32.totalorder %v1878_v16, 0  ;;  %vm1255_vm2 = vcmp.gt.s32.totalorder %v1878_v16, 1  ;;  %v1886_v18 = vld [vmem:[#allocation6 + $0x94] ss:$12 sps:$4 sm:$0xff]   ;;  %v1889_v19 = vld [vmem:[#allocation6 + $0x50] ss:$12 sps:$4 sm:$0xff]  }
  0x2f   :  { %v343_v20 = vsel %vm1252_vm1, 1, %v1767_v1  ;;  %v462_v21 = vsel %vm1255_vm2, 1, %v1767_v1  ;;  %v1895_v22 = vld [vmem:[#allocation6 + $0x90] ss:$12 sps:$4 sm:$0xff]   ;;  %vm1264_vm3 = vcmp.gt.s32.totalorder %v1878_v16, 4  ;;  %vm1270_vm4 = vcmp.gt.s32.totalorder %v1878_v16, 6 }
  0x30   :  { %242 = vmatpush1.bf16.msra.mxu0 %v1842_v5  ;;  %1355 = vmatpush3.bf16.msra.mxu1 %v1862_v12  ;;  %v1899_v23 = vld [vmem:[#allocation6 + $0xac] ss:$12 sps:$4 sm:$0xff]   ;;  %v1902_v24 = vld [vmem:[#allocation6 + $0x68] ss:$12 sps:$4 sm:$0xff]   ;;  %v822_v25 = vsel %vm1264_vm3, 1, %v1767_v1  ;;  %v1062_v28 = vsel %vm1270_vm4, 1, %v1767_v1 }
  0x31   :  { %243 = vmatprep.subr.bf16.mxu0 %v1845_v6  ;;  %1356 = vmatprep.subr.bf16.mxu1 %v1766_v0  ;;  %v1907_v26 = vld [vmem:[#allocation6 + $0xa8] ss:$12 sps:$4 sm:$0xff]   ;;  %v1912_v27 = vld [vmem:[#allocation6 + $0x80] ss:$12 sps:$4 sm:$0xff]   ;;  %v1918_v29 = vld [vmem:[#allocation6 + $0x98] ss:$12 sps:$4 sm:$0xff]  }
  0x32   :  { %345 = vperm.xlu0 %1526, %v343_v20   ;;  %v1769_v30 = vmov 0.0|0.0   ;;  %v1925_v31 = vld [vmem:[#allocation6 + $0xb0] ss:$12 sps:$4 sm:$0xff]   ;;  %v90_v33 = vshrl.u32 %v89_v32, 7  ;;  %v107_v39 = vld [vmem:[#allocation3] sm:$0xff]  ;;  %v108_v46 = vld [vmem:[#allocation3 + $0x8] sm:$0xff] }
  0x33   :  { %v87_v35 = vld [vmem:[%s2270_s3] sm:$0x7]  ;;  %vm1258_vm7 = vcmp.gt.s32.totalorder %v1878_v16, 2  ;;  %vm1261_vm8 = vcmp.gt.s32.totalorder %v1878_v16, 3  ;;  %vm1267_vm9 = vcmp.gt.s32.totalorder %v1878_v16, 5  ;;  %vm1273_vm10 = vcmp.gt.s32.totalorder %v1878_v16, 7 }
  0x34   :  { %244 = vmatpush1.bf16.msra.mxu0 %v1848_v7  ;;  %1357 = vmatpush3.bf16.msra.mxu1 %v1872_v15  ;;  %v91_v34 = vsub.s32 0, %v90_v33  ;;  %v95_v36 = vsub.s32 1, %v90_v33  ;;  %v99_v57 = vsub.s32 2, %v90_v33  ;;  %v109_v63 = vld [vmem:[#allocation3 + $0x10] sm:$0xff]  ;;  %s1770_s3 = smov [#allocation9]   ;;  %s1771_s23 = smov [#allocation8]  }
  0x35   :  { %245 = vmatprep.subr.bf16.mxu0 %v1851_v8  ;;  %1358 = vmatprep.subr.bf16.mxu1 %v1766_v0  ;;  %s1212_s22 = sshll.u32 %s1770_s3, 4  ;;  %s1199_s24 = sshll.u32 %s1771_s23, 4  ;;  %s1213_s22 = int_to_ptr.vmem [resolvable:$true] %s1212_s22  ;;  %s2236_s24 = int_to_ptr.vmem [resolvable:$true] %s1199_s24 }
  0x36   :  { %464 = vperm.xlu0 %1526, %v462_v21   ;;  %v1966_v37 = vrot.slane %v87_v35, %v91_v34  ;;  %v1968_v38 = vrot.slane %v87_v35, %v95_v36  ;;  %v1972_v58 = vrot.slane %v87_v35, %v99_v57  ;;  %s1708_s25 = scalar_lea.vmem %s1213_s22, 128  ;;  %p1713_p3 = scmp.lt.s32.totalorder %s1213_s22, %s1213_s22 }
  0x37   :  { %p1709_p2 = scmp.ne.s32.totalorder %s1213_s22, %s1708_s25  ;;  %p1714_p4 = scmp.lt.s32.totalorder %s1708_s25, %s1708_s25 }
  0x38   :  { %246 = vmatpush1.bf16.msra.mxu0 %v1856_v10  ;;  %1359 = vmatpush3.bf16.msra.mxu1 %v1889_v19 }
  0x39   :  { %247 = vmatprep.subr.bf16.mxu0 %v1858_v11  ;;  %1360 = vmatprep.subr.bf16.mxu1 %v1766_v0  ;;  %p1715_p5 = por %p1714_p4, %p1713_p3 }
  0x3a   :  { %824 = vperm.xlu0 %1526, %v822_v25  }
  0x3b   :  { %p1716_p6 = pnand %p1715_p5, %p1709_p2 }
  0x3c   :  { %248 = vmatpush1.bf16.msra.mxu0 %v1865_v13  ;;  %1361 = vmatpush3.bf16.msra.mxu1 %v1902_v24 }
  0x3d   :  { %249 = vmatprep.subr.bf16.mxu0 %v1868_v14  ;;  %1362 = vmatprep.subr.bf16.mxu1 %v1766_v0 }
  0x3e   :  { %1064 = vperm.xlu0 %1526, %v1062_v28  }
  0x40   :  { %250 = vmatpush1.bf16.msra.mxu0 %v1881_v17  ;;  %1363 = vmatpush3.bf16.msra.mxu1 %v1912_v27 }
  0x41   :  { %251 = vmatprep.subr.bf16.mxu0 %v1886_v18  ;;  %1364 = vmatprep.subr.bf16.mxu1 %v1766_v0 }
  0x44   :  { %252 = vmatpush1.bf16.msra.mxu0 %v1895_v22  ;;  %1365 = vmatpush3.bf16.msra.mxu1 %v1918_v29 }
  0x45   :  { %253 = vmatprep.subr.bf16.mxu0 %v1899_v23  ;;  %1366 = vmatprep.subr.bf16.mxu1 %v1766_v0 }
  0x48   :  { %254 = vmatpush1.bf16.msra.mxu0 %v1907_v26  ;;  %1367 = vmatpush3.bf16.msra.mxu1 %v1925_v31 }
  0x49   :  { %357 = vmatprep.subr.bf16.mxu0 %v1834_v2  ;;  %1372 = vmatprep.subr.bf16.mxu1 %v1766_v0 }
  0x4b   :  { %272 = vmatmul.mubr.bf16.vlgmr.msra.gmra.mrb[0].mxu0 %v1769_v30  ;;  %1369 = vmatmul.mubr.bf16.vlgmr.msra.gmra.mrb[0].mxu1 %v1769_v30 }
  0x4c   :  { %358 = vmatpush1.bf16.msra.mxu0 %v1836_v3  ;;  %389 = vmatprep.mubr.bf16.mxu0 %v1767_v1 }
  0x4d   :  { %359 = vmatprep.subr.bf16.mxu0 %v1839_v4  ;;  %1373 = vmatpush3.bf16.msra.mxu1 %v1853_v9 }
  0x4e   :  { %1374 = vmatprep.subr.bf16.mxu1 %v1766_v0  ;;  %1388 = vmatprep.mubr.msk.bf16.mxu1 %vm1768_vm0, %v1766_v0 }
  0x50   :  { %360 = vmatpush1.bf16.msra.mxu0 %v1842_v5 }
  0x51   :  { %361 = vmatprep.subr.bf16.mxu0 %v1845_v6  ;;  %1375 = vmatpush3.bf16.msra.mxu1 %v1862_v12 }
  0x52   :  { %1376 = vmatprep.subr.bf16.mxu1 %v1766_v0 }
  0x54   :  { %362 = vmatpush1.bf16.msra.mxu0 %v1848_v7 }
  0x55   :  { %363 = vmatprep.subr.bf16.mxu0 %v1851_v8  ;;  %1377 = vmatpush3.bf16.msra.mxu1 %v1872_v15 }
  0x56   :  { %1378 = vmatprep.subr.bf16.mxu1 %v1766_v0 }
  0x58   :  { %364 = vmatpush1.bf16.msra.mxu0 %v1856_v10 }
  0x59   :  { %365 = vmatprep.subr.bf16.mxu0 %v1858_v11  ;;  %1379 = vmatpush3.bf16.msra.mxu1 %v1889_v19 }
  0x5a   :  { %1380 = vmatprep.subr.bf16.mxu1 %v1766_v0 }
  0x5c   :  { %366 = vmatpush1.bf16.msra.mxu0 %v1865_v13 }
  0x5d   :  { %367 = vmatprep.subr.bf16.mxu0 %v1868_v14  ;;  %1381 = vmatpush3.bf16.msra.mxu1 %v1902_v24 }
  0x5e   :  { %1382 = vmatprep.subr.bf16.mxu1 %v1766_v0 }
  0x60   :  { %368 = vmatpush1.bf16.msra.mxu0 %v1881_v17 }
  0x61   :  { %369 = vmatprep.subr.bf16.mxu0 %v1886_v18  ;;  %1383 = vmatpush3.bf16.msra.mxu1 %v1912_v27 }
  0x62   :  { %1384 = vmatprep.subr.bf16.mxu1 %v1766_v0 }
  0x64   :  { %370 = vmatpush1.bf16.msra.mxu0 %v1895_v22 }
  0x65   :  { %371 = vmatprep.subr.bf16.mxu0 %v1899_v23  ;;  %1385 = vmatpush3.bf16.msra.mxu1 %v1918_v29 }
  0x66   :  { %1386 = vmatprep.subr.bf16.mxu1 %v1766_v0 }
  0x68   :  { %372 = vmatpush1.bf16.msra.mxu0 %v1907_v26 }
  0x69   :  { %477 = vmatprep.subr.bf16.mxu0 %v1834_v2  ;;  %1387 = vmatpush3.bf16.msra.mxu1 %v1925_v31 }
  0x6a   :  { %1392 = vmatprep.subr.bf16.mxu1 %v1766_v0 }
  0xb1   :  { %v346_v32 = vpop.permute.xlu0 %345 }
  0xb2   :  { %vm347_vm5 = vcmp.eq.s32.totalorder %v346_v32, 1 }
  0xb3   :  { %vm1274_vm6 = vmpackc.low %vm347_vm5, %vm347_vm5 }
 0x11e   :  { %v273_v40 = vpop.f32.mrb[0].mxu0  ;;  %v314_v50 = vpop.f32.mrb[0].mxu1 }
 0x11f   :  { %v274_v41 = vadd.f32 %v273_v40, %v1966_v37  ;;  %v275_v42 = vpop.f32.mrb[1].mxu0  ;;  %v1370_v52 = vpop.f32.mrb[1].mxu1  ;;  %v315_v61 = vadd.f32 %v314_v50, %v1972_v58 }
 0x120   :  { %v276_v43 = vadd.f32 %v275_v42, %v1968_v38  ;;  %v277_v44 = vpop.f32.mrb[2].mxu0  ;;  %v317_v53 = vpop.f32.mrb[2].mxu1  ;;  %v702_v42 = vsel %vm1261_vm8, 1, %v1767_v1 }
 0x121   :  { %v320_v45 = vadd.f32 %v274_v41, %v107_v39  ;;  %v278_v47 = vpop.f32.mrb[3].mxu0  ;;  %v1371_v54 = vpop.f32.mrb[3].mxu1  ;;  %v582_v41 = vsel %vm1258_vm7, 1, %v1767_v1  ;;  %v1182_v44 = vsel %vm1273_vm10, 1, %v1767_v1 }
 0x122   :  { %v327_v49 = vadd.f32 %v276_v43, %v108_v46  ;;  %584 = vperm.xlu1 %1527, %v582_v41   ;;  %v942_v43 = vsel %vm1267_vm9, 1, %v1767_v1  ;;  %v465_v41 = vpop.permute.xlu0 %464 }
 0x123   :  { %v1250_v48 = vmul.f32 -1.442695, %v320_v45  ;;  %v353_v45 = vld [vmem:[#allocation3 + $0x18] sm:$0xff]  ;;  %vm466_vm11 = vcmp.eq.s32.totalorder %v465_v41, 1 }
 0x124   :  { %v1251_v51 = vmul.f32 -1.442695, %v327_v49 }
 0x125   :  { %1560 = vpow2.f32 %v1250_v48 }
 0x126   :  { %1562 = vpow2.f32 %v1251_v51  ;;  %704 = vperm.xlu1 %1527, %v702_v42  }
 0x12a   :  { %944 = vperm.xlu1 %1527, %v942_v43  }
 0x12e   :  { %1184 = vperm.xlu1 %1527, %v1182_v44  }
 0x12f   :  { %v1561_v55 = vpop.eup %1560 }
 0x130   :  { %v324_v56 = vadd.f32 1.0, %v1561_v55  ;;  %v1563_v59 = vpop.eup %1562  ;;  %v354_v55 = vld [vmem:[#allocation3 + $0x20] sm:$0xff] }
 0x131   :  { %v331_v60 = vadd.f32 1.0, %v1563_v59 }
 0x132   :  { %1564 = vrcp.f32 %v324_v56 }
 0x133   :  { %1566 = vrcp.f32 %v331_v60 }
 0x13c   :  { %v1565_v62 = vpop.eup %1564 }
 0x13d   :  { %v334_v20 = vmul.f32 %v1565_v62, %v315_v61  ;;  %v1567_v25 = vpop.eup %1566 }
 0x13e   :  { %v337_v28 = vsub.f32 1.0, %v1567_v25  ;;  %v339_v36 = vmul.f32 0.0, %v1567_v25 }
 0x13f   :  { %v335_v21 = vadd.f32 %v334_v20, %v109_v63 }
 0x141   :  { %1568 = vtanh.f32 %v335_v21 }
 0x14b   :  { %v1569_v30 = vpop.eup %1568 }
 0x14c   :  { %v338_v34 = vmul.f32 %v1569_v30, %v337_v28  ;;  %v355_v28 = vld [vmem:[#allocation3 + $0x28] sm:$0xff] }
 0x14e   :  { %v340_v33 = vadd.f32 %v339_v36, %v338_v34 }
 0x150   :  { %v1975_v35 = vsel %vm347_vm5, %v340_v33, 0.0  ;;  %v1275_v39 = vpack.c.bf16 %v340_v33, %v340_v33 }
 0x151   :  { %v349_v40 = vpack.c.bf16 %v1975_v35, %v1975_v35 }
 0x152   :  { %1276 = vmatmul.mubr.msk.bf16.vlgmr.msra.gmra.mrb[4].mxu0 %vm1274_vm6, %v1275_v39  ;;  %1389 = vmatmul.mubr.msk.bf16.vlgmr.msra.gmra.mrb[4].mxu1 %vm1274_vm6, %v1275_v39 }
 0x153   :  { %350 = vst [vmem:[#allocation8] sm:$0xf] %v349_v40  ;;  %478 = vmatpush1.bf16.msra.mxu0 %v1836_v3  ;;  %1393 = vmatpush3.bf16.msra.mxu1 %v1853_v9 }
 0x154   :  { %479 = vmatprep.subr.bf16.mxu0 %v1839_v4  ;;  %1394 = vmatprep.subr.bf16.mxu1 %v1766_v0 }
 0x155   :  { %509 = vmatprep.mubr.bf16.mxu0 %v1767_v1  ;;  %1408 = vmatprep.mubr.msk.bf16.mxu1 %vm1768_vm0, %v1766_v0 }
 0x157   :  { %480 = vmatpush1.bf16.msra.mxu0 %v1842_v5  ;;  %1395 = vmatpush3.bf16.msra.mxu1 %v1862_v12 }
 0x158   :  { %481 = vmatprep.subr.bf16.mxu0 %v1845_v6  ;;  %1396 = vmatprep.subr.bf16.mxu1 %v1766_v0 }
 0x15b   :  { %482 = vmatpush1.bf16.msra.mxu0 %v1848_v7  ;;  %1397 = vmatpush3.bf16.msra.mxu1 %v1872_v15 }
 0x15c   :  { %483 = vmatprep.subr.bf16.mxu0 %v1851_v8  ;;  %1398 = vmatprep.subr.bf16.mxu1 %v1766_v0 }
 0x15f   :  { %484 = vmatpush1.bf16.msra.mxu0 %v1856_v10  ;;  %1399 = vmatpush3.bf16.msra.mxu1 %v1889_v19 }
 0x160   :  { %485 = vmatprep.subr.bf16.mxu0 %v1858_v11  ;;  %1400 = vmatprep.subr.bf16.mxu1 %v1766_v0 }
 0x163   :  { %486 = vmatpush1.bf16.msra.mxu0 %v1865_v13  ;;  %1401 = vmatpush3.bf16.msra.mxu1 %v1902_v24 }
 0x164   :  { %487 = vmatprep.subr.bf16.mxu0 %v1868_v14  ;;  %1402 = vmatprep.subr.bf16.mxu1 %v1766_v0 }
 0x167   :  { %488 = vmatpush1.bf16.msra.mxu0 %v1881_v17  ;;  %1403 = vmatpush3.bf16.msra.mxu1 %v1912_v27 }
 0x168   :  { %489 = vmatprep.subr.bf16.mxu0 %v1886_v18  ;;  %1404 = vmatprep.subr.bf16.mxu1 %v1766_v0 }
 0x16b   :  { %490 = vmatpush1.bf16.msra.mxu0 %v1895_v22  ;;  %1405 = vmatpush3.bf16.msra.mxu1 %v1918_v29 }
 0x16c   :  { %491 = vmatprep.subr.bf16.mxu0 %v1899_v23  ;;  %1406 = vmatprep.subr.bf16.mxu1 %v1766_v0 }
 0x16f   :  { %492 = vmatpush1.bf16.msra.mxu0 %v1907_v26  ;;  %1407 = vmatpush3.bf16.msra.mxu1 %v1925_v31 }
 0x170   :  { %597 = vmatprep.subr.bf16.mxu0 %v1834_v2  ;;  %1412 = vmatprep.subr.bf16.mxu1 %v1766_v0 }
 0x225   :  { %v391_v46 = vpop.f32.mrb[4].mxu0  ;;  %v432_v47 = vpop.f32.mrb[4].mxu1 }
 0x226   :  { %v392_v48 = vadd.f32 %v391_v46, %v1966_v37  ;;  %v393_v49 = vpop.f32.mrb[5].mxu0  ;;  %v1390_v50 = vpop.f32.mrb[5].mxu1  ;;  %v433_v21 = vadd.f32 %v432_v47, %v1972_v58 }
 0x227   :  { %v394_v51 = vadd.f32 %v393_v49, %v1968_v38  ;;  %v395_v52 = vpop.f32.mrb[6].mxu0  ;;  %v435_v53 = vpop.f32.mrb[6].mxu1 }
 0x228   :  { %v438_v54 = vadd.f32 %v392_v48, %v353_v45  ;;  %v396_v56 = vpop.f32.mrb[7].mxu0  ;;  %v1391_v57 = vpop.f32.mrb[7].mxu1 }
 0x229   :  { %v445_v59 = vadd.f32 %v394_v51, %v354_v55  ;;  %v474_v56 = vld [vmem:[#allocation3 + $0x38] sm:$0xff] }
 0x22a   :  { %v1253_v16 = vmul.f32 -1.442695, %v438_v54 }
 0x22b   :  { %v1254_v60 = vmul.f32 -1.442695, %v445_v59 }
 0x22c   :  { %1570 = vpow2.f32 %v1253_v16 }
 0x22d   :  { %1572 = vpow2.f32 %v1254_v60 }
 0x236   :  { %v1571_v61 = vpop.eup %1570 }
 0x237   :  { %v442_v62 = vadd.f32 1.0, %v1571_v61  ;;  %v1573_v63 = vpop.eup %1572 }
 0x238   :  { %v449_v20 = vadd.f32 1.0, %v1573_v63 }
 0x239   :  { %1574 = vrcp.f32 %v442_v62 }
 0x23a   :  { %1576 = vrcp.f32 %v449_v20 }
 0x243   :  { %v1575_v25 = vpop.eup %1574 }
 0x244   :  { %v452_v30 = vmul.f32 %v1575_v25, %v433_v21  ;;  %v1577_v34 = vpop.eup %1576 }
 0x245   :  { %v455_v36 = vsub.f32 1.0, %v1577_v34  ;;  %v457_v40 = vmul.f32 %v1577_v34, %v1975_v35 }
 0x246   :  { %v453_v32 = vadd.f32 %v452_v30, %v355_v28  ;;  %v475_v30 = vld [vmem:[#allocation3 + $0x40] sm:$0xff] }
 0x248   :  { %1578 = vtanh.f32 %v453_v32 }
 0x252   :  { %v1579_v33 = vpop.eup %1578 }
 0x253   :  { %v456_v39 = vmul.f32 %v1579_v33, %v455_v36 }
 0x255   :  { %v458_v42 = vadd.f32 %v457_v40, %v456_v39  ;;  %v585_v40 = vpop.permute.xlu1 %584 }
 0x256   :  { %vm586_vm12 = vcmp.eq.s32.totalorder %v585_v40, 1 }
 0x257   :  { %v467_v43 = vsel %vm466_vm11, %v458_v42, 0.0  ;;  %v2027_v44 = vsel %vm466_vm11, %v458_v42, %v1975_v35  ;;  %v473_v35 = vld [vmem:[#allocation3 + $0x30] sm:$0xff] }
 0x258   :  { %v468_v45 = vpack.c.bf16 %v467_v43, %v467_v43  ;;  %v476_v46 = vpack.c.bf16 %v2027_v44, %v2027_v44 }
 0x25a   :  { %470 = vst [vmem:[#allocation8 + $0x4] sm:$0xf] %v468_v45  ;;  %510 = vmatmul.mubr.bf16.vlgmr.msra.gmra.mrb[8].mxu0 %v476_v46  ;;  %1409 = vmatmul.mubr.bf16.vlgmr.msra.gmra.mrb[8].mxu1 %v476_v46 }
 0x25b   :  { %598 = vmatpush1.bf16.msra.mxu0 %v1836_v3  ;;  %1413 = vmatpush3.bf16.msra.mxu1 %v1853_v9 }
 0x25c   :  { %599 = vmatprep.subr.bf16.mxu0 %v1839_v4  ;;  %1414 = vmatprep.subr.bf16.mxu1 %v1766_v0 }
 0x25d   :  { %629 = vmatprep.mubr.bf16.mxu0 %v1767_v1  ;;  %1428 = vmatprep.mubr.msk.bf16.mxu1 %vm1768_vm0, %v1766_v0 }
 0x25f   :  { %600 = vmatpush1.bf16.msra.mxu0 %v1842_v5  ;;  %1415 = vmatpush3.bf16.msra.mxu1 %v1862_v12 }
 0x260   :  { %601 = vmatprep.subr.bf16.mxu0 %v1845_v6  ;;  %1416 = vmatprep.subr.bf16.mxu1 %v1766_v0 }
 0x263   :  { %602 = vmatpush1.bf16.msra.mxu0 %v1848_v7  ;;  %1417 = vmatpush3.bf16.msra.mxu1 %v1872_v15 }
 0x264   :  { %603 = vmatprep.subr.bf16.mxu0 %v1851_v8  ;;  %1418 = vmatprep.subr.bf16.mxu1 %v1766_v0 }
 0x267   :  { %604 = vmatpush1.bf16.msra.mxu0 %v1856_v10  ;;  %1419 = vmatpush3.bf16.msra.mxu1 %v1889_v19 }
 0x268   :  { %605 = vmatprep.subr.bf16.mxu0 %v1858_v11  ;;  %1420 = vmatprep.subr.bf16.mxu1 %v1766_v0 }
 0x26b   :  { %606 = vmatpush1.bf16.msra.mxu0 %v1865_v13  ;;  %1421 = vmatpush3.bf16.msra.mxu1 %v1902_v24 }
 0x26c   :  { %607 = vmatprep.subr.bf16.mxu0 %v1868_v14  ;;  %1422 = vmatprep.subr.bf16.mxu1 %v1766_v0 }
 0x26f   :  { %608 = vmatpush1.bf16.msra.mxu0 %v1881_v17  ;;  %1423 = vmatpush3.bf16.msra.mxu1 %v1912_v27 }
 0x270   :  { %609 = vmatprep.subr.bf16.mxu0 %v1886_v18  ;;  %1424 = vmatprep.subr.bf16.mxu1 %v1766_v0 }
 0x273   :  { %610 = vmatpush1.bf16.msra.mxu0 %v1895_v22  ;;  %1425 = vmatpush3.bf16.msra.mxu1 %v1918_v29 }
 0x274   :  { %611 = vmatprep.subr.bf16.mxu0 %v1899_v23  ;;  %1426 = vmatprep.subr.bf16.mxu1 %v1766_v0 }
 0x277   :  { %612 = vmatpush1.bf16.msra.mxu0 %v1907_v26  ;;  %1427 = vmatpush3.bf16.msra.mxu1 %v1925_v31 }
 0x278   :  { %717 = vmatprep.subr.bf16.mxu0 %v1834_v2  ;;  %1432 = vmatprep.subr.bf16.mxu1 %v1766_v0 }
 0x32d   :  { %v511_v47 = vpop.f32.mrb[8].mxu0  ;;  %v552_v48 = vpop.f32.mrb[8].mxu1 }
 0x32e   :  { %v512_v49 = vadd.f32 %v511_v47, %v1966_v37  ;;  %v513_v50 = vpop.f32.mrb[9].mxu0  ;;  %v1410_v51 = vpop.f32.mrb[9].mxu1  ;;  %v553_v25 = vadd.f32 %v552_v48, %v1972_v58 }
 0x32f   :  { %v514_v52 = vadd.f32 %v513_v50, %v1968_v38  ;;  %v515_v53 = vpop.f32.mrb[10].mxu0  ;;  %v555_v54 = vpop.f32.mrb[10].mxu1 }
 0x330   :  { %v558_v55 = vadd.f32 %v512_v49, %v473_v35  ;;  %v516_v57 = vpop.f32.mrb[11].mxu0  ;;  %v1411_v16 = vpop.f32.mrb[11].mxu1 }
 0x331   :  { %v565_v60 = vadd.f32 %v514_v52, %v474_v56  ;;  %v594_v57 = vld [vmem:[#allocation3 + $0x50] sm:$0xff] }
 0x332   :  { %v1256_v59 = vmul.f32 -1.442695, %v558_v55 }
 0x333   :  { %v1257_v61 = vmul.f32 -1.442695, %v565_v60 }
 0x334   :  { %1580 = vpow2.f32 %v1256_v59 }
 0x335   :  { %1582 = vpow2.f32 %v1257_v61 }
 0x33e   :  { %v1581_v62 = vpop.eup %1580 }
 0x33f   :  { %v562_v63 = vadd.f32 1.0, %v1581_v62  ;;  %v1583_v20 = vpop.eup %1582 }
 0x340   :  { %v569_v21 = vadd.f32 1.0, %v1583_v20 }
 0x341   :  { %1584 = vrcp.f32 %v562_v63 }
 0x342   :  { %1586 = vrcp.f32 %v569_v21 }
 0x34b   :  { %v1585_v28 = vpop.eup %1584 }
 0x34c   :  { %v572_v32 = vmul.f32 %v1585_v28, %v553_v25  ;;  %v1587_v36 = vpop.eup %1586 }
 0x34d   :  { %v575_v33 = vsub.f32 1.0, %v1587_v36  ;;  %v577_v42 = vmul.f32 %v1587_v36, %v2027_v44 }
 0x34e   :  { %v573_v34 = vadd.f32 %v572_v32, %v475_v30  ;;  %v595_v32 = vld [vmem:[#allocation3 + $0x58] sm:$0xff] }
 0x350   :  { %1588 = vtanh.f32 %v573_v34 }
 0x35a   :  { %v1589_v39 = vpop.eup %1588 }
 0x35b   :  { %v576_v41 = vmul.f32 %v1589_v39, %v575_v33 }
 0x35d   :  { %v578_v43 = vadd.f32 %v577_v42, %v576_v41 }
 0x35f   :  { %v587_v45 = vsel %vm586_vm12, %v578_v43, 0.0  ;;  %v2071_v46 = vsel %vm586_vm12, %v578_v43, %v2027_v44  ;;  %v593_v44 = vld [vmem:[#allocation3 + $0x48] sm:$0xff]  ;;  %v705_v43 = vpop.permute.xlu1 %704 }
 0x360   :  { %v588_v35 = vpack.c.bf16 %v587_v45, %v587_v45  ;;  %v596_v47 = vpack.c.bf16 %v2071_v46, %v2071_v46  ;;  %vm706_vm13 = vcmp.eq.s32.totalorder %v705_v43, 1 }
 0x362   :  { %590 = vst [vmem:[#allocation8 + $0x8] sm:$0xf] %v588_v35  ;;  %630 = vmatmul.mubr.bf16.vlgmr.msra.gmra.mrb[12].mxu0 %v596_v47  ;;  %1429 = vmatmul.mubr.bf16.vlgmr.msra.gmra.mrb[12].mxu1 %v596_v47 }
 0x363   :  { %718 = vmatpush1.bf16.msra.mxu0 %v1836_v3  ;;  %1433 = vmatpush3.bf16.msra.mxu1 %v1853_v9 }
 0x364   :  { %719 = vmatprep.subr.bf16.mxu0 %v1839_v4  ;;  %1434 = vmatprep.subr.bf16.mxu1 %v1766_v0 }
 0x365   :  { %749 = vmatprep.mubr.bf16.mxu0 %v1767_v1  ;;  %1448 = vmatprep.mubr.msk.bf16.mxu1 %vm1768_vm0, %v1766_v0 }
 0x367   :  { %720 = vmatpush1.bf16.msra.mxu0 %v1842_v5  ;;  %1435 = vmatpush3.bf16.msra.mxu1 %v1862_v12 }
 0x368   :  { %721 = vmatprep.subr.bf16.mxu0 %v1845_v6  ;;  %1436 = vmatprep.subr.bf16.mxu1 %v1766_v0 }
 0x36b   :  { %722 = vmatpush1.bf16.msra.mxu0 %v1848_v7  ;;  %1437 = vmatpush3.bf16.msra.mxu1 %v1872_v15 }
 0x36c   :  { %723 = vmatprep.subr.bf16.mxu0 %v1851_v8  ;;  %1438 = vmatprep.subr.bf16.mxu1 %v1766_v0 }
 0x36f   :  { %724 = vmatpush1.bf16.msra.mxu0 %v1856_v10  ;;  %1439 = vmatpush3.bf16.msra.mxu1 %v1889_v19 }
 0x370   :  { %725 = vmatprep.subr.bf16.mxu0 %v1858_v11  ;;  %1440 = vmatprep.subr.bf16.mxu1 %v1766_v0 }
 0x373   :  { %726 = vmatpush1.bf16.msra.mxu0 %v1865_v13  ;;  %1441 = vmatpush3.bf16.msra.mxu1 %v1902_v24 }
 0x374   :  { %727 = vmatprep.subr.bf16.mxu0 %v1868_v14  ;;  %1442 = vmatprep.subr.bf16.mxu1 %v1766_v0 }
 0x377   :  { %728 = vmatpush1.bf16.msra.mxu0 %v1881_v17  ;;  %1443 = vmatpush3.bf16.msra.mxu1 %v1912_v27 }
 0x378   :  { %729 = vmatprep.subr.bf16.mxu0 %v1886_v18  ;;  %1444 = vmatprep.subr.bf16.mxu1 %v1766_v0 }
 0x37b   :  { %730 = vmatpush1.bf16.msra.mxu0 %v1895_v22  ;;  %1445 = vmatpush3.bf16.msra.mxu1 %v1918_v29 }
 0x37c   :  { %731 = vmatprep.subr.bf16.mxu0 %v1899_v23  ;;  %1446 = vmatprep.subr.bf16.mxu1 %v1766_v0 }
 0x37f   :  { %732 = vmatpush1.bf16.msra.mxu0 %v1907_v26  ;;  %1447 = vmatpush3.bf16.msra.mxu1 %v1925_v31 }
 0x380   :  { %837 = vmatprep.subr.bf16.mxu0 %v1834_v2  ;;  %1452 = vmatprep.subr.bf16.mxu1 %v1766_v0 }
 0x435   :  { %v631_v48 = vpop.f32.mrb[12].mxu0  ;;  %v672_v49 = vpop.f32.mrb[12].mxu1 }
 0x436   :  { %v632_v50 = vadd.f32 %v631_v48, %v1966_v37  ;;  %v633_v51 = vpop.f32.mrb[13].mxu0  ;;  %v1430_v52 = vpop.f32.mrb[13].mxu1  ;;  %v673_v28 = vadd.f32 %v672_v49, %v1972_v58 }
 0x437   :  { %v634_v53 = vadd.f32 %v633_v51, %v1968_v38  ;;  %v635_v54 = vpop.f32.mrb[14].mxu0  ;;  %v675_v55 = vpop.f32.mrb[14].mxu1 }
 0x438   :  { %v678_v56 = vadd.f32 %v632_v50, %v593_v44  ;;  %v636_v16 = vpop.f32.mrb[15].mxu0  ;;  %v1431_v59 = vpop.f32.mrb[15].mxu1  ;;  %v714_v54 = vld [vmem:[#allocation3 + $0x68] sm:$0xff] }
 0x439   :  { %v685_v61 = vadd.f32 %v634_v53, %v594_v57 }
 0x43a   :  { %v1259_v60 = vmul.f32 -1.442695, %v678_v56 }
 0x43b   :  { %v1260_v62 = vmul.f32 -1.442695, %v685_v61 }
 0x43c   :  { %1590 = vpow2.f32 %v1259_v60 }
 0x43d   :  { %1592 = vpow2.f32 %v1260_v62 }
 0x446   :  { %v1591_v63 = vpop.eup %1590 }
 0x447   :  { %v682_v20 = vadd.f32 1.0, %v1591_v63  ;;  %v1593_v21 = vpop.eup %1592 }
 0x448   :  { %v689_v25 = vadd.f32 1.0, %v1593_v21  ;;  %v715_v21 = vld [vmem:[#allocation3 + $0x70] sm:$0xff] }
 0x449   :  { %1594 = vrcp.f32 %v682_v20 }
 0x44a   :  { %1596 = vrcp.f32 %v689_v25 }
 0x453   :  { %v1595_v30 = vpop.eup %1594 }
 0x454   :  { %v692_v34 = vmul.f32 %v1595_v30, %v673_v28  ;;  %v1597_v33 = vpop.eup %1596 }
 0x455   :  { %v695_v39 = vsub.f32 1.0, %v1597_v33  ;;  %v697_v42 = vmul.f32 %v1597_v33, %v2071_v46 }
 0x456   :  { %v693_v36 = vadd.f32 %v692_v34, %v595_v32 }
 0x458   :  { %1598 = vtanh.f32 %v693_v36 }
 0x462   :  { %v1599_v40 = vpop.eup %1598 }
 0x463   :  { %v696_v41 = vmul.f32 %v1599_v40, %v695_v39  ;;  %v825_v39 = vpop.permute.xlu0 %824 }
 0x464   :  { %vm826_vm14 = vcmp.eq.s32.totalorder %v825_v39, 1  ;;  %v1658_v39 = vld [vmem:[#allocation6 + $0x94] ss:$12 sps:$4 sm:$0xff]  }
 0x465   :  { %v698_v45 = vadd.f32 %v697_v42, %v696_v41 }
 0x467   :  { %v707_v35 = vsel %vm706_vm13, %v698_v45, 0.0  ;;  %v2115_v47 = vsel %vm706_vm13, %v698_v45, %v2071_v46 }
 0x468   :  { %v708_v44 = vpack.c.bf16 %v707_v35, %v707_v35  ;;  %v716_v48 = vpack.c.bf16 %v2115_v47, %v2115_v47  ;;  %v2163_v35 = vld [vmem:[#allocation6] ss:$12 sps:$4 sm:$0xff]  }
 0x46a   :  { %710 = vst [vmem:[#allocation8 + $0xc] sm:$0xf] %v708_v44  ;;  %750 = vmatmul.mubr.bf16.vlgmr.msra.gmra.mrb[16].mxu0 %v716_v48  ;;  %1449 = vmatmul.mubr.bf16.vlgmr.msra.gmra.mrb[16].mxu1 %v716_v48  ;;  %v2167_v44 = vld [vmem:[#allocation6 + $0x1c] ss:$12 sps:$4 sm:$0xff]   ;;  %v2178_v48 = vld [vmem:[#allocation6 + $0x34] ss:$12 sps:$4 sm:$0xff]  }
 0x46b   :  { %838 = vmatpush1.bf16.msra.mxu0 %v1836_v3  ;;  %1453 = vmatpush3.bf16.msra.mxu1 %v1853_v9  ;;  %v713_v3 = vld [vmem:[#allocation3 + $0x60] sm:$0xff] }
 0x46c   :  { %839 = vmatprep.subr.bf16.mxu0 %v1839_v4  ;;  %1454 = vmatprep.subr.bf16.mxu1 %v1766_v0 }
 0x46d   :  { %869 = vmatprep.mubr.bf16.mxu0 %v1767_v1  ;;  %1468 = vmatprep.mubr.msk.bf16.mxu1 %vm1768_vm0, %v1766_v0 }
 0x46f   :  { %840 = vmatpush1.bf16.msra.mxu0 %v1842_v5  ;;  %1455 = vmatpush3.bf16.msra.mxu1 %v1862_v12 }
 0x470   :  { %841 = vmatprep.subr.bf16.mxu0 %v1845_v6  ;;  %1456 = vmatprep.subr.bf16.mxu1 %v1766_v0 }
 0x473   :  { %842 = vmatpush1.bf16.msra.mxu0 %v1848_v7  ;;  %1457 = vmatpush3.bf16.msra.mxu1 %v1872_v15 }
 0x474   :  { %843 = vmatprep.subr.bf16.mxu0 %v1851_v8  ;;  %1458 = vmatprep.subr.bf16.mxu1 %v1766_v0 }
 0x477   :  { %844 = vmatpush1.bf16.msra.mxu0 %v1856_v10  ;;  %1459 = vmatpush3.bf16.msra.mxu1 %v1889_v19 }
 0x478   :  { %845 = vmatprep.subr.bf16.mxu0 %v1858_v11  ;;  %1460 = vmatprep.subr.bf16.mxu1 %v1766_v0 }
 0x47b   :  { %846 = vmatpush1.bf16.msra.mxu0 %v1865_v13  ;;  %1461 = vmatpush3.bf16.msra.mxu1 %v1902_v24 }
 0x47c   :  { %847 = vmatprep.subr.bf16.mxu0 %v1868_v14  ;;  %1462 = vmatprep.subr.bf16.mxu1 %v1766_v0 }
 0x47f   :  { %848 = vmatpush1.bf16.msra.mxu0 %v1881_v17  ;;  %1463 = vmatpush3.bf16.msra.mxu1 %v1912_v27 }
 0x480   :  { %849 = vmatprep.subr.bf16.mxu0 %v1886_v18  ;;  %1464 = vmatprep.subr.bf16.mxu1 %v1766_v0 }
 0x483   :  { %850 = vmatpush1.bf16.msra.mxu0 %v1895_v22  ;;  %1465 = vmatpush3.bf16.msra.mxu1 %v1918_v29 }
 0x484   :  { %851 = vmatprep.subr.bf16.mxu0 %v1899_v23  ;;  %1466 = vmatprep.subr.bf16.mxu1 %v1766_v0 }
 0x487   :  { %852 = vmatpush1.bf16.msra.mxu0 %v1907_v26  ;;  %1467 = vmatpush3.bf16.msra.mxu1 %v1925_v31 }
 0x488   :  { %957 = vmatprep.subr.bf16.mxu0 %v1834_v2  ;;  %1472 = vmatprep.subr.bf16.mxu1 %v1766_v0 }
 0x53d   :  { %v751_v4 = vpop.f32.mrb[16].mxu0  ;;  %v792_v5 = vpop.f32.mrb[16].mxu1 }
 0x53e   :  { %v752_v6 = vadd.f32 %v751_v4, %v1966_v37  ;;  %v753_v46 = vpop.f32.mrb[17].mxu0  ;;  %v1450_v49 = vpop.f32.mrb[17].mxu1  ;;  %v793_v63 = vadd.f32 %v792_v5, %v1972_v58 }
 0x53f   :  { %v754_v50 = vadd.f32 %v753_v46, %v1968_v38  ;;  %v755_v51 = vpop.f32.mrb[18].mxu0  ;;  %v795_v52 = vpop.f32.mrb[18].mxu1  ;;  %v835_v46 = vld [vmem:[#allocation3 + $0x88] sm:$0xff] }
 0x540   :  { %v798_v53 = vadd.f32 %v752_v6, %v713_v3  ;;  %v756_v55 = vpop.f32.mrb[19].mxu0  ;;  %v1451_v56 = vpop.f32.mrb[19].mxu1 }
 0x541   :  { %v805_v16 = vadd.f32 %v754_v50, %v714_v54  ;;  %v945_v56 = vpop.permute.xlu1 %944 }
 0x542   :  { %v1262_v57 = vmul.f32 -1.442695, %v798_v53  ;;  %vm946_vm15 = vcmp.eq.s32.totalorder %v945_v56, 1  ;;  %v1073_v56 = vld [vmem:[#allocation3 + $0xa8] sm:$0xff] }
 0x543   :  { %v1263_v2 = vmul.f32 -1.442695, %v805_v16 }
 0x544   :  { %1600 = vpow2.f32 %v1262_v57 }
 0x545   :  { %1602 = vpow2.f32 %v1263_v2 }
 0x54e   :  { %v1601_v59 = vpop.eup %1600 }
 0x54f   :  { %v802_v60 = vadd.f32 1.0, %v1601_v59  ;;  %v1603_v61 = vpop.eup %1602 }
 0x550   :  { %v809_v62 = vadd.f32 1.0, %v1603_v61  ;;  %v1645_v61 = vld [vmem:[#allocation6 + $0x8] ss:$12 sps:$4 sm:$0xff]  }
 0x551   :  { %1604 = vrcp.f32 %v802_v60 }
 0x552   :  { %1606 = vrcp.f32 %v809_v62  ;;  %v1646_v62 = vld [vmem:[#allocation6 + $0x20] ss:$12 sps:$4 sm:$0xff]  }
 0x55b   :  { %v1605_v20 = vpop.eup %1604 }
 0x55c   :  { %v812_v25 = vmul.f32 %v1605_v20, %v793_v63  ;;  %v1607_v30 = vpop.eup %1606  ;;  %v1647_v63 = vld [vmem:[#allocation6 + $0x30] ss:$12 sps:$4 sm:$0xff]   ;;  %v1648_v20 = vld [vmem:[#allocation6 + $0x38] ss:$12 sps:$4 sm:$0xff]  }
 0x55d   :  { %v815_v32 = vsub.f32 1.0, %v1607_v30  ;;  %v817_v33 = vmul.f32 %v1607_v30, %v2115_v47  ;;  %v1653_v30 = vld [vmem:[#allocation6 + $0x60] ss:$12 sps:$4 sm:$0xff]  }
 0x55e   :  { %v813_v28 = vadd.f32 %v812_v25, %v715_v21  ;;  %v1649_v21 = vld [vmem:[#allocation6 + $0x4c] ss:$12 sps:$4 sm:$0xff]   ;;  %v1651_v25 = vld [vmem:[#allocation6 + $0x50] ss:$12 sps:$4 sm:$0xff]  }
 0x560   :  { %1608 = vtanh.f32 %v813_v28  ;;  %v1652_v28 = vld [vmem:[#allocation6 + $0x64] ss:$12 sps:$4 sm:$0xff]  }
 0x56a   :  { %v1609_v34 = vpop.eup %1608 }
 0x56b   :  { %v816_v36 = vmul.f32 %v1609_v34, %v815_v32  ;;  %v1654_v32 = vld [vmem:[#allocation6 + $0x68] ss:$12 sps:$4 sm:$0xff]  }
 0x56c   :  { %v1655_v34 = vld [vmem:[#allocation6 + $0x7c] ss:$12 sps:$4 sm:$0xff]  }
 0x56d   :  { %v818_v40 = vadd.f32 %v817_v33, %v816_v36  ;;  %v1656_v36 = vld [vmem:[#allocation6 + $0x78] ss:$12 sps:$4 sm:$0xff]   ;;  %v1657_v33 = vld [vmem:[#allocation6 + $0x80] ss:$12 sps:$4 sm:$0xff]  }
 0x56f   :  { %v827_v41 = vsel %vm826_vm14, %v818_v40, 0.0  ;;  %v2159_v42 = vsel %vm826_vm14, %v818_v40, %v2115_v47  ;;  %v2174_v47 = vld [vmem:[#allocation6 + $0x18] ss:$12 sps:$4 sm:$0xff]   ;;  %v1659_v40 = vld [vmem:[#allocation6 + $0x90] ss:$12 sps:$4 sm:$0xff]  }
 0x570   :  { %v828_v43 = vpack.c.bf16 %v827_v41, %v827_v41  ;;  %v836_v45 = vpack.c.bf16 %v2159_v42, %v2159_v42  ;;  %v1660_v41 = vld [vmem:[#allocation6 + $0x98] ss:$12 sps:$4 sm:$0xff]  }
 0x572   :  { %830 = vst [vmem:[#allocation8 + $0x10] sm:$0xf] %v828_v43  ;;  %870 = vmatmul.mubr.bf16.vlgmr.msra.gmra.mrb[20].mxu0 %v836_v45  ;;  %1469 = vmatmul.mubr.bf16.vlgmr.msra.gmra.mrb[20].mxu1 %v836_v45  ;;  %v1662_v43 = vld [vmem:[#allocation6 + $0xa8] ss:$12 sps:$4 sm:$0xff]   ;;  %v1663_v45 = vld [vmem:[#allocation6 + $0xb0] ss:$12 sps:$4 sm:$0xff]  }
 0x573   :  { %958 = vmatpush1.bf16.msra.mxu0 %v2163_v35  ;;  %1473 = vmatpush3.bf16.msra.mxu1 %v1853_v9 }
 0x574   :  { %959 = vmatprep.subr.bf16.mxu0 %v2167_v44  ;;  %1474 = vmatprep.subr.bf16.mxu1 %v1766_v0 }
 0x575   :  { %989 = vmatprep.mubr.bf16.mxu0 %v1767_v1  ;;  %1488 = vmatprep.mubr.msk.bf16.mxu1 %vm1768_vm0, %v1766_v0 }
 0x577   :  { %960 = vmatpush1.bf16.msra.mxu0 %v2174_v47  ;;  %1475 = vmatpush3.bf16.msra.mxu1 %v1862_v12 }
 0x578   :  { %961 = vmatprep.subr.bf16.mxu0 %v2178_v48  ;;  %1476 = vmatprep.subr.bf16.mxu1 %v1766_v0 }
 0x57b   :  { %962 = vmatpush1.bf16.msra.mxu0 %v1848_v7  ;;  %1477 = vmatpush3.bf16.msra.mxu1 %v1872_v15  ;;  %v1644_v7 = vld [vmem:[#allocation6 + $0x4] ss:$12 sps:$4 sm:$0xff]  }
 0x57c   :  { %963 = vmatprep.subr.bf16.mxu0 %v1851_v8  ;;  %1478 = vmatprep.subr.bf16.mxu1 %v1766_v0  ;;  %v833_v8 = vld [vmem:[#allocation3 + $0x78] sm:$0xff] }
 0x57f   :  { %964 = vmatpush1.bf16.msra.mxu0 %v1856_v10  ;;  %1479 = vmatpush3.bf16.msra.mxu1 %v1889_v19  ;;  %v834_v19 = vld [vmem:[#allocation3 + $0x80] sm:$0xff] }
 0x580   :  { %965 = vmatprep.subr.bf16.mxu0 %v1858_v11  ;;  %1480 = vmatprep.subr.bf16.mxu1 %v1766_v0 }
 0x583   :  { %966 = vmatpush1.bf16.msra.mxu0 %v1865_v13  ;;  %1481 = vmatpush3.bf16.msra.mxu1 %v1902_v24 }
 0x584   :  { %967 = vmatprep.subr.bf16.mxu0 %v1868_v14  ;;  %1482 = vmatprep.subr.bf16.mxu1 %v1766_v0 }
 0x587   :  { %968 = vmatpush1.bf16.msra.mxu0 %v1881_v17  ;;  %1483 = vmatpush3.bf16.msra.mxu1 %v1912_v27 }
 0x588   :  { %969 = vmatprep.subr.bf16.mxu0 %v1886_v18  ;;  %1484 = vmatprep.subr.bf16.mxu1 %v1766_v0 }
 0x58b   :  { %970 = vmatpush1.bf16.msra.mxu0 %v1895_v22  ;;  %1485 = vmatpush3.bf16.msra.mxu1 %v1918_v29 }
 0x58c   :  { %971 = vmatprep.subr.bf16.mxu0 %v1899_v23  ;;  %1486 = vmatprep.subr.bf16.mxu1 %v1766_v0 }
 0x58f   :  { %972 = vmatpush1.bf16.msra.mxu0 %v1907_v26  ;;  %1487 = vmatpush3.bf16.msra.mxu1 %v1925_v31 }
 0x590   :  { %1077 = vmatprep.subr.bf16.mxu0 %v1644_v7  ;;  %1492 = vmatprep.subr.bf16.mxu1 %v1766_v0 }
 0x645   :  { %v871_v9 = vpop.f32.mrb[20].mxu0  ;;  %v912_v10 = vpop.f32.mrb[20].mxu1 }
 0x646   :  { %v872_v11 = vadd.f32 %v871_v9, %v1966_v37  ;;  %v873_v12 = vpop.f32.mrb[21].mxu0  ;;  %v1470_v13 = vpop.f32.mrb[21].mxu1  ;;  %v913_v5 = vadd.f32 %v912_v10, %v1972_v58 }
 0x647   :  { %v874_v14 = vadd.f32 %v873_v12, %v1968_v38  ;;  %v875_v15 = vpop.f32.mrb[22].mxu0  ;;  %v915_v17 = vpop.f32.mrb[22].mxu1  ;;  %v954_v13 = vld [vmem:[#allocation3 + $0x98] sm:$0xff] }
 0x648   :  { %v918_v18 = vadd.f32 %v872_v11, %v833_v8  ;;  %v876_v22 = vpop.f32.mrb[23].mxu0  ;;  %v1471_v23 = vpop.f32.mrb[23].mxu1 }
 0x649   :  { %v925_v26 = vadd.f32 %v874_v14, %v834_v19 }
 0x64a   :  { %v1265_v24 = vmul.f32 -1.442695, %v918_v18 }
 0x64b   :  { %v1266_v27 = vmul.f32 -1.442695, %v925_v26 }
 0x64c   :  { %1610 = vpow2.f32 %v1265_v24 }
 0x64d   :  { %1612 = vpow2.f32 %v1266_v27 }
 0x656   :  { %v1611_v29 = vpop.eup %1610 }
 0x657   :  { %v922_v31 = vadd.f32 1.0, %v1611_v29  ;;  %v1613_v3 = vpop.eup %1612  ;;  %v955_v29 = vld [vmem:[#allocation3 + $0xa0] sm:$0xff] }
 0x658   :  { %v929_v4 = vadd.f32 1.0, %v1613_v3 }
 0x659   :  { %1614 = vrcp.f32 %v922_v31 }
 0x65a   :  { %1616 = vrcp.f32 %v929_v4 }
 0x663   :  { %v1615_v6 = vpop.eup %1614 }
 0x664   :  { %v932_v49 = vmul.f32 %v1615_v6, %v913_v5  ;;  %v1617_v51 = vpop.eup %1616 }
 0x665   :  { %v935_v52 = vsub.f32 1.0, %v1617_v51  ;;  %v937_v55 = vmul.f32 %v1617_v51, %v2159_v42 }
 0x666   :  { %v933_v50 = vadd.f32 %v932_v49, %v835_v46  ;;  %v1065_v46 = vpop.permute.xlu0 %1064 }
 0x668   :  { %1618 = vtanh.f32 %v933_v50 }
 0x672   :  { %v1619_v53 = vpop.eup %1618 }
 0x673   :  { %v936_v54 = vmul.f32 %v1619_v53, %v935_v52 }
 0x675   :  { %v938_v57 = vadd.f32 %v937_v55, %v936_v54 }
 0x677   :  { %v947_v16 = vsel %vm946_vm15, %v938_v57, 0.0  ;;  %v2210_v2 = vsel %vm946_vm15, %v938_v57, %v2159_v42  ;;  %v1661_v42 = vld [vmem:[#allocation6 + $0xac] ss:$12 sps:$4 sm:$0xff]  }
 0x678   :  { %v948_v59 = vpack.c.bf16 %v947_v16, %v947_v16  ;;  %v956_v60 = vpack.c.bf16 %v2210_v2, %v2210_v2 }
 0x67a   :  { %950 = vst [vmem:[#allocation8 + $0x14] sm:$0xf] %v948_v59  ;;  %990 = vmatmul.mubr.bf16.vlgmr.msra.gmra.mrb[24].mxu0 %v956_v60  ;;  %1489 = vmatmul.mubr.bf16.vlgmr.msra.gmra.mrb[24].mxu1 %v956_v60 }
 0x67b   :  { %1078 = vmatpush1.bf16.msra.mxu0 %v2163_v35  ;;  %1493 = vmatpush3.bf16.msra.mxu1 %v1645_v61  ;;  %v953_v35 = vld [vmem:[#allocation3 + $0x90] sm:$0xff] }
 0x67c   :  { %1079 = vmatprep.subr.bf16.mxu0 %v2167_v44  ;;  %1494 = vmatprep.subr.bf16.mxu1 %v1766_v0 }
 0x67d   :  { %1109 = vmatprep.mubr.bf16.mxu0 %v1767_v1  ;;  %1508 = vmatprep.mubr.msk.bf16.mxu1 %vm1768_vm0, %v1766_v0  ;;  %v1650_v1 = vld [vmem:[#allocation6 + $0x48] ss:$12 sps:$4 sm:$0xff]   ;;  %vm1066_vm0 = vcmp.eq.s32.totalorder %v1065_v46, 1 }
 0x67f   :  { %1080 = vmatpush1.bf16.msra.mxu0 %v2174_v47  ;;  %1495 = vmatpush3.bf16.msra.mxu1 %v1646_v62 }
 0x680   :  { %1081 = vmatprep.subr.bf16.mxu0 %v2178_v48  ;;  %1496 = vmatprep.subr.bf16.mxu1 %v1766_v0 }
 0x683   :  { %1082 = vmatpush1.bf16.msra.mxu0 %v1647_v63  ;;  %1497 = vmatpush3.bf16.msra.mxu1 %v1648_v20 }
 0x684   :  { %1083 = vmatprep.subr.bf16.mxu0 %v1649_v21  ;;  %1498 = vmatprep.subr.bf16.mxu1 %v1766_v0 }
 0x687   :  { %1084 = vmatpush1.bf16.msra.mxu0 %v1650_v1  ;;  %1499 = vmatpush3.bf16.msra.mxu1 %v1651_v25  ;;  %v1074_v1 = vld [vmem:[#allocation3 + $0xb0] sm:$0xff] }
 0x688   :  { %1085 = vmatprep.subr.bf16.mxu0 %v1652_v28  ;;  %1500 = vmatprep.subr.bf16.mxu1 %v1766_v0 }
 0x68b   :  { %1086 = vmatpush1.bf16.msra.mxu0 %v1653_v30  ;;  %1501 = vmatpush3.bf16.msra.mxu1 %v1654_v32 }
 0x68c   :  { %1087 = vmatprep.subr.bf16.mxu0 %v1655_v34  ;;  %1502 = vmatprep.subr.bf16.mxu1 %v1766_v0 }
 0x68f   :  { %1088 = vmatpush1.bf16.msra.mxu0 %v1656_v36  ;;  %1503 = vmatpush3.bf16.msra.mxu1 %v1657_v33 }
 0x690   :  { %1089 = vmatprep.subr.bf16.mxu0 %v1658_v39  ;;  %1504 = vmatprep.subr.bf16.mxu1 %v1766_v0 }
 0x693   :  { %1090 = vmatpush1.bf16.msra.mxu0 %v1659_v40  ;;  %1505 = vmatpush3.bf16.msra.mxu1 %v1660_v41 }
 0x694   :  { %1091 = vmatprep.subr.bf16.mxu0 %v1661_v42  ;;  %1506 = vmatprep.subr.bf16.mxu1 %v1766_v0 }
 0x697   :  { %1092 = vmatpush1.bf16.msra.mxu0 %v1662_v43  ;;  %1507 = vmatpush3.bf16.msra.mxu1 %v1663_v45 }
 0x74d   :  { %v991_v44 = vpop.f32.mrb[24].mxu0  ;;  %v1032_v47 = vpop.f32.mrb[24].mxu1 }
 0x74e   :  { %v992_v48 = vadd.f32 %v991_v44, %v1966_v37  ;;  %v993_v7 = vpop.f32.mrb[25].mxu0  ;;  %v1490_v8 = vpop.f32.mrb[25].mxu1  ;;  %v1033_v26 = vadd.f32 %v1032_v47, %v1972_v58 }
 0x74f   :  { %v994_v9 = vadd.f32 %v993_v7, %v1968_v38  ;;  %v995_v10 = vpop.f32.mrb[26].mxu0  ;;  %v1035_v11 = vpop.f32.mrb[26].mxu1 }
 0x750   :  { %v1038_v12 = vadd.f32 %v992_v48, %v953_v35  ;;  %v996_v14 = vpop.f32.mrb[27].mxu0  ;;  %v1491_v15 = vpop.f32.mrb[27].mxu1 }
 0x751   :  { %v1045_v17 = vadd.f32 %v994_v9, %v954_v13  ;;  %v1185_v44 = vpop.permute.xlu1 %1184 }
 0x752   :  { %v1268_v0 = vmul.f32 -1.442695, %v1038_v12  ;;  %vm1186_vm1 = vcmp.eq.s32.totalorder %v1185_v44, 1 }
 0x753   :  { %v1269_v18 = vmul.f32 -1.442695, %v1045_v17 }
 0x754   :  { %1620 = vpow2.f32 %v1268_v0 }
 0x755   :  { %1622 = vpow2.f32 %v1269_v18 }
 0x75e   :  { %v1621_v19 = vpop.eup %1620 }
 0x75f   :  { %v1042_v22 = vadd.f32 1.0, %v1621_v19  ;;  %v1623_v23 = vpop.eup %1622 }
 0x760   :  { %v1049_v24 = vadd.f32 1.0, %v1623_v23 }
 0x761   :  { %1624 = vrcp.f32 %v1042_v22 }
 0x762   :  { %1626 = vrcp.f32 %v1049_v24 }
 0x76b   :  { %v1625_v27 = vpop.eup %1624 }
 0x76c   :  { %v1052_v31 = vmul.f32 %v1625_v27, %v1033_v26  ;;  %v1627_v4 = vpop.eup %1626 }
 0x76d   :  { %v1055_v5 = vsub.f32 1.0, %v1627_v4  ;;  %v1057_v50 = vmul.f32 %v1627_v4, %v2210_v2 }
 0x76e   :  { %v1053_v3 = vadd.f32 %v1052_v31, %v955_v29 }
 0x770   :  { %1628 = vtanh.f32 %v1053_v3 }
 0x77a   :  { %v1629_v6 = vpop.eup %1628 }
 0x77b   :  { %v1056_v49 = vmul.f32 %v1629_v6, %v1055_v5 }
 0x77d   :  { %v1058_v51 = vadd.f32 %v1057_v50, %v1056_v49 }
 0x77f   :  { %v1067_v52 = vsel %vm1066_vm0, %v1058_v51, 0.0  ;;  %v1071_v53 = vsel %vm1066_vm0, %v1058_v51, %v2210_v2 }
 0x780   :  { %v1068_v54 = vpack.c.bf16 %v1067_v52, %v1067_v52  ;;  %v1076_v55 = vpack.c.bf16 %v1071_v53, %v1071_v53 }
 0x782   :  { %1070 = vst [vmem:[#allocation8 + $0x18] sm:$0xf] %v1068_v54  ;;  %1110 = vmatmul.mubr.bf16.vlgmr.msra.gmra.mrb[28].mxu0 %v1076_v55  ;;  %1509 = vmatmul.mubr.bf16.vlgmr.msra.gmra.mrb[28].mxu1 %v1076_v55 }
 0x855   :  { %v1111_v57 = vpop.f32.mrb[28].mxu0  ;;  %v1152_v16 = vpop.f32.mrb[28].mxu1 }
 0x856   :  { %v1112_v59 = vadd.f32 %v1111_v57, %v1966_v37  ;;  %v1113_v60 = vpop.f32.mrb[29].mxu0  ;;  %v1510_v61 = vpop.f32.mrb[29].mxu1  ;;  %v1153_v39 = vadd.f32 %v1152_v16, %v1972_v58 }
 0x857   :  { %v1114_v62 = vadd.f32 %v1113_v60, %v1968_v38  ;;  %v1115_v63 = vpop.f32.mrb[30].mxu0  ;;  %v1155_v20 = vpop.f32.mrb[30].mxu1  ;;  %v1075_v38 = vld [vmem:[#allocation3 + $0xb8] sm:$0xff] }
 0x858   :  { %v1158_v21 = vadd.f32 %v1112_v59, %v1073_v56  ;;  %v1116_v25 = vpop.f32.mrb[31].mxu0  ;;  %v1511_v2 = vpop.f32.mrb[31].mxu1 }
 0x859   :  { %v1165_v30 = vadd.f32 %v1114_v62, %v1074_v1 }
 0x85a   :  { %v1271_v28 = vmul.f32 -1.442695, %v1158_v21 }
 0x85b   :  { %v1272_v32 = vmul.f32 -1.442695, %v1165_v30 }
 0x85c   :  { %1630 = vpow2.f32 %v1271_v28 }
 0x85d   :  { %1632 = vpow2.f32 %v1272_v32 }
 0x866   :  { %v1631_v34 = vpop.eup %1630 }
 0x867   :  { %v1162_v36 = vadd.f32 1.0, %v1631_v34  ;;  %v1633_v33 = vpop.eup %1632 }
 0x868   :  { %v1169_v37 = vadd.f32 1.0, %v1633_v33 }
 0x869   :  { %1634 = vrcp.f32 %v1162_v36 }
 0x86a   :  { %1636 = vrcp.f32 %v1169_v37 }
 0x873   :  { %v1635_v40 = vpop.eup %1634 }
 0x874   :  { %v1172_v41 = vmul.f32 %v1635_v40, %v1153_v39  ;;  %v1637_v43 = vpop.eup %1636 }
 0x875   :  { %v1175_v45 = vsub.f32 1.0, %v1637_v43  ;;  %v1177_v48 = vmul.f32 %v1637_v43, %v1071_v53 }
 0x876   :  { %v1173_v42 = vadd.f32 %v1172_v41, %v1075_v38 }
 0x878   :  { %1638 = vtanh.f32 %v1173_v42 }
 0x882   :  { %v1639_v35 = vpop.eup %1638 }
 0x883   :  { %v1176_v47 = vmul.f32 %v1639_v35, %v1175_v45 }
 0x885   :  { %v1178_v7 = vadd.f32 %v1177_v48, %v1176_v47 }
 0x887   :  { %v1187_v58 = vsel %vm1186_vm1, %v1178_v7, 0.0  ;;  %v1191_v8 = vsel %vm1186_vm1, %v1178_v7, %v1071_v53 }
 0x888   :  { %v1188_v9 = vpack.c.bf16 %v1187_v58, %v1187_v58  ;;  %1193 = vst [vmem:[#allocation9] sm:$0xff] %v1191_v8 }
 0x889   :  { %1719 = shalt.err (!%p1716_p6)
}
 0x88a   :  { %s1720_s28 = scalar_lea.hbm %s2272_s5, 128 }
 0x88b   :  { %p1721_p7 = scmp.ne.s32.totalorder %s2272_s5, %s1720_s28  ;;  %p1724_p8 = scmp.lt.u32.totalorder %s1720_s28, %s2272_s5 }
 0x88d   :  { %p1726_p9 = pnand %p1724_p8, %p1721_p7 }
 0x88f   :  { %1729 = shalt.err (!%p1726_p9)
}
 0x890   :  { %1215 = dma.vmem_to_hbm [thread:$0]  %s1213_s22, 128, %s2272_s5, [#allocation10]   ;;  %1190 = vst [vmem:[#allocation8 + $0x1c] sm:$0xf] %v1188_v9 }
 0x891   :  { %s1730_s10 = scalar_lea.vmem %s2236_s24, 512  ;;  %p1735_p11 = scmp.lt.s32.totalorder %s2236_s24, %s2236_s24 }
 0x892   :  { %p1731_p10 = scmp.ne.s32.totalorder %s2236_s24, %s1730_s10  ;;  %p1736_p12 = scmp.lt.s32.totalorder %s1730_s10, %s1730_s10 }
 0x894   :  { %p1737_p13 = por %p1736_p12, %p1735_p11 }
 0x896   :  { %p1738_p0 = pnand %p1737_p13, %p1731_p10 }
 0x898   :  { %1741 = shalt.err (!%p1738_p0)
}
 0x899   :  { %s1742_s13 = scalar_lea.hbm %s2271_s4, 512 }
 0x89a   :  { %p1743_p1 = scmp.ne.s32.totalorder %s2271_s4, %s1742_s13  ;;  %p1746_p2 = scmp.lt.u32.totalorder %s1742_s13, %s2271_s4 }
 0x89c   :  { %p1748_p3 = pnand %p1746_p2, %p1743_p1 }
 0x89e   :  { %1751 = shalt.err (!%p1748_p3)
}
 0x89f   :  { %s1772_s5 = smov 64   ;;  %s1773_s17 = smov 4  }
 0x8a0   :  { %1205 = dma.vmem_to_hbm [thread:$0]  %s2236_s24, 512, %s2271_s4, [#allocation5], %s1772_s5, %s1772_s5, %s1773_s17  }
 0x8a1   :  { %1756 = dma.done.wait [#allocation5], 512  }
 0x8a2   :  { %1757 = vsyncadd [#allocation5], 4294966784 }
 0x8a3   :  { %1758 = dma.done.wait [#allocation10], 128  }
 0x8a4   :  { %1759 = vsyncadd [#allocation10], 4294967168 }
 0x8a5   :  { %1222 = vsyncpa [#allocation4], 1 }
 0x8a6   :  { %1223 = vsyncpa [#allocation7], 1 }
 0x8a7   :  { %1224 = vsyncpa [#allocation5], 1 }
 0x8a8   :  { %1225 = vsyncpa [#allocation10], 1 }

</bundles_post_ra>
